<compile_context>
chip_gen: v5e
topology: v5e:2x2
jax: 0.10.0
libtpu: 0.0.40
codegen_flags: <defaults>
</compile_context>

<pallas_src>
import functools

import jax
import jax.numpy as jnp
from jax.experimental import pallas as pl
from jax.experimental.pallas import tpu as pltpu

N_CLASS = 19   # len(set(sentence.split())) in the reference script
N_HIDDEN = 8   # n_hidden in the PyTorch script


def bilstm_kernel(x_ref,       # (T*BP, C+1)  time-major, batch padded to BP, ones column for bias
                  wih_ref,     # (C+1, 8H)    [Wih_f | Wih_b] with fused bias row, g-gates x2
                  whh_ref,     # (H, 8H)      [Whh_f | Whh_b], g-gates x2
                  state_ref,   # (4, BP, H)   [h0_f, h0_b, c0_f, c0_b]
                  whead_ref,   # (2H+1, C)    [W_fc^T ; b_fc]
                  out_ref,     # (B, C)
                  *, seq_len, bpad, hidden, batch):
    T, BP, H = seq_len, bpad, hidden
    H4 = 4 * H
    C = out_ref.shape[1]

    # Hoisted input projection for every timestep and both directions, bias folded in via the
    # ones column of x.  Single MXU matmul, off the serial recurrence chain.
    g_all = jnp.dot(x_ref[...], wih_ref[...],
                    preferred_element_type=jnp.float32)            # (T*BP, 8H)

    whh = whh_ref[...]
    whead = whead_ref[...]

    def mac(h, w_rows, init):
        # init + h @ W as VPU broadcast multiply-adds (keeps MXU push/pop latency off the
        # serial path).  Balanced-tree sum keeps the f32 add dependence chain short.
        terms = [h[:, k:k + 1] * w_rows[k] for k in range(len(w_rows))]
        while len(terms) > 1:
            nxt = [terms[i] + terms[i + 1] for i in range(0, len(terms) - 1, 2)]
            if len(terms) % 2:
                nxt.append(terms[-1])
            terms = nxt
        return init + terms[0]

    def cell(z_x, h, c, w_rows):
        z = mac(h, w_rows, z_x)                      # (BP, 4H) fused pre-activation
        s = jax.nn.sigmoid(z)                        # one EUP region over the whole 4H slab
        i = s[:, 0:H]
        f = s[:, H:2 * H]
        g = 2.0 * s[:, 2 * H:3 * H] - 1.0            # tanh(g): g-gate weights pre-scaled by 2
        o = s[:, 3 * H:4 * H]
        c_new = f * c + i * g
        h_new = o * jnp.tanh(c_new)                  # the only other EUP push per step
        return h_new, c_new

    # Recurrence-loop weight rows, broadcast over sublanes ONCE (JAX does not CSE
    # broadcast_in_dim, so this must not sit inside the unrolled loop).
    whh_f_rows = [jnp.broadcast_to(whh[k:k + 1, 0:H4], (BP, H4)) for k in range(H)]
    # Reverse direction / head rows are used once each -> no pre-broadcast needed.
    whh_b_rows = [whh[k:k + 1, H4:2 * H4] for k in range(H)]
    head_rows = [whead[k:k + 1, :] for k in range(2 * H)]
    head_bias = whead[2 * H:2 * H + 1, :]            # (1, C), broadcasts in the final add

    # ---- forward direction: fully unrolled T-step recurrence, state lives in vregs; every
    # per-step slab slice starts on a sublane-tile boundary because BP == 8.
    h = state_ref[0]
    c = state_ref[2]
    for t in range(T):                               # T static -> unrolled at trace time
        h, c = cell(g_all[t * BP:(t + 1) * BP, 0:H4], h, c, whh_f_rows)
    h_fwd = h

    # ---- reverse direction: outputs[-1] reverse half == one cell on x[T-1] from (h0[1], c0[1]).
    # (Exact because the head only reads outputs[-1]; a full reverse pass is unnecessary.)
    h_bwd, _ = cell(g_all[(T - 1) * BP:T * BP, H4:2 * H4],
                    state_ref[1], state_ref[3], whh_b_rows)

    # ---- fused Linear head: concat(h_fwd, h_bwd) @ W_fc^T + b_fc as one VPU MAC pass.
    out = mac(h_bwd, head_rows[H:2 * H], mac(h_fwd, head_rows[0:H], head_bias))
    out_ref[...] = out[0:batch, :]                   # drop the padded batch rows


@jax.jit
def bilstm_forward(X_btc, h0, c0,
                   w_ih_f, w_hh_f, b_ih_f, b_hh_f,
                   w_ih_b, w_hh_b, b_ih_b, b_hh_b,
                   w_fc, b_fc):
    B, T, C = X_btc.shape
    H = w_hh_f.shape[1]
    BP = -(-B // 8) * 8                              # pad batch to the f32 sublane tile

    # X.transpose(0, 1) -> time-major, pad batch, append ones column (folds the LSTM bias
    # into the hoisted input-projection matmul).
    x_tbc = jnp.transpose(X_btc, (1, 0, 2)).astype(jnp.float32)
    x_pad = jnp.zeros((T, BP, C), jnp.float32).at[:, :B, :].set(x_tbc)
    x_aug = jnp.concatenate([x_pad.reshape(T * BP, C),
                             jnp.ones((T * BP, 1), jnp.float32)], axis=1)

    def pack_dir(w_ih, w_hh, b_ih, b_hh):
        # PyTorch layout (4H, in)/(4H, H)/(4H,), gate order (i, f, g, o).  Pre-scale the
        # g-gate block by 2 so the kernel can derive tanh(g) = 2*sigmoid(z_g) - 1 from the
        # slab sigmoid (one EUP push saved per step).
        scale = jnp.concatenate([jnp.ones((2 * H,), jnp.float32),
                                 jnp.full((H,), 2.0, jnp.float32),
                                 jnp.ones((H,), jnp.float32)])
        return ((w_ih * scale[:, None]).T,           # (C, 4H)
                (w_hh * scale[:, None]).T,           # (H, 4H)
                (b_ih + b_hh) * scale)               # (4H,)

    wih_f, whh_f, b_f = pack_dir(w_ih_f, w_hh_f, b_ih_f, b_hh_f)
    wih_b, whh_b, b_b = pack_dir(w_ih_b, w_hh_b, b_ih_b, b_hh_b)

    # Pack the 12 tiny parameter arrays into a few wide operands (fewer DMAs).
    wih_aug = jnp.concatenate(
        [jnp.concatenate([wih_f, wih_b], axis=1),
         jnp.concatenate([b_f, b_b])[None, :]], axis=0)            # (C+1, 8H)
    whh_pack = jnp.concatenate([whh_f, whh_b], axis=1)             # (H, 8H)
    state = (jnp.zeros((4, BP, H), jnp.float32)
             .at[0:2, :B, :].set(h0.astype(jnp.float32))
             .at[2:4, :B, :].set(c0.astype(jnp.float32)))          # (4, BP, H)
    w_head = jnp.concatenate([w_fc.T, b_fc[None, :]], axis=0)      # (2H+1, C)

    vm = pl.BlockSpec(memory_space=pltpu.MemorySpace.VMEM)
    kernel = functools.partial(bilstm_kernel, seq_len=T, bpad=BP, hidden=H, batch=B)
    return pl.pallas_call(
        kernel,
        out_shape=jax.ShapeDtypeStruct((B, C), jnp.float32),
        in_specs=[vm] * 5,
        out_specs=vm,
    )(x_aug, wih_aug, whh_pack, state, w_head)


def reference_bilstm(X_btc, h0, c0,
                     w_ih_f, w_hh_f, b_ih_f, b_hh_f,
                     w_ih_b, w_hh_b, b_ih_b, b_hh_b, w_fc, b_fc):
    """Pure-JAX reference doing the FULL bidirectional pass (checks the one-step shortcut)."""
    x = jnp.transpose(X_btc, (1, 0, 2))
    T = x.shape[0]
    H = w_hh_f.shape[1]

    def step(x_t, h, c, w_ih, w_hh, b_ih, b_hh):
        z = x_t @ w_ih.T + b_ih + h @ w_hh.T + b_hh
        i = jax.nn.sigmoid(z[:, 0:H])
        f = jax.nn.sigmoid(z[:, H:2 * H])
        g = jnp.tanh(z[:, 2 * H:3 * H])
        o = jax.nn.sigmoid(z[:, 3 * H:4 * H])
        c = f * c + i * g
        return o * jnp.tanh(c), c

    h, c = h0[0], c0[0]
    for t in range(T):
        h, c = step(x[t], h, c, w_ih_f, w_hh_f, b_ih_f, b_hh_f)
    h_fwd_last = h

    h, c = h0[1], c0[1]
    outs_rev = [None] * T
    for t in range(T - 1, -1, -1):
        h, c = step(x[t], h, c, w_ih_b, w_hh_b, b_ih_b, b_hh_b)
        outs_rev[t] = h
    h_bwd_last = outs_rev[T - 1]

    return jnp.concatenate([h_fwd_last, h_bwd_last], axis=-1) @ w_fc.T + b_fc


if __name__ == "__main__":
    B, T = 2, 8
    key = jax.random.PRNGKey(0)
    ks = jax.random.split(key, 13)
    kH = 1.0 / float(N_HIDDEN) ** 0.5
    kF = 1.0 / float(2 * N_HIDDEN) ** 0.5

    def u(k, shape, bound):
        return jax.random.uniform(k, shape, jnp.float32, -bound, bound)

    # nn.LSTM parameters (PyTorch layout, gate order i, f, g, o), per direction.
    w_ih_f = u(ks[0], (4 * N_HIDDEN, N_CLASS), kH)
    w_hh_f = u(ks[1], (4 * N_HIDDEN, N_HIDDEN), kH)
    b_ih_f = u(ks[2], (4 * N_HIDDEN,), kH)
    b_hh_f = u(ks[3], (4 * N_HIDDEN,), kH)
    w_ih_b = u(ks[4], (4 * N_HIDDEN, N_CLASS), kH)
    w_hh_b = u(ks[5], (4 * N_HIDDEN, N_HIDDEN), kH)
    b_ih_b = u(ks[6], (4 * N_HIDDEN,), kH)
    b_hh_b = u(ks[7], (4 * N_HIDDEN,), kH)
    # nn.Linear(n_hidden*2, n_class)
    w_fc = u(ks[8], (N_CLASS, 2 * N_HIDDEN), kF)
    b_fc = u(ks[9], (N_CLASS,), kF)

    # One-hot token input X (batch, seq, n_class), as in the reference training script.
    idx = jax.random.randint(ks[10], (B, T), 0, N_CLASS)
    X = jax.nn.one_hot(idx, N_CLASS, dtype=jnp.float32)
    # torch.randn hidden/cell state from the PyTorch forward, generated deterministically here.
    h0 = jax.random.normal(ks[11], (2, B, N_HIDDEN), jnp.float32)
    c0 = jax.random.normal(ks[12], (2, B, N_HIDDEN), jnp.float32)

    out = bilstm_forward(X, h0, c0,
                         w_ih_f, w_hh_f, b_ih_f, b_hh_f,
                         w_ih_b, w_hh_b, b_ih_b, b_hh_b, w_fc, b_fc)
    out = jax.block_until_ready(out)
    assert out.shape == (B, N_CLASS) and out.dtype == jnp.float32

    ref = reference_bilstm(X, h0, c0,
                           w_ih_f, w_hh_f, b_ih_f, b_hh_f,
                           w_ih_b, w_hh_b, b_ih_b, b_hh_b, w_fc, b_fc)
    max_err = float(jnp.max(jnp.abs(out - ref)))
    assert max_err < 1e-3, f"mismatch vs reference: {max_err}"
    print("KERNEL_OK")
</pallas_src>

<mosaic_0001>
module attributes {stable_mosaic.version = 11 : i64} {
  func.func @bilstm_kernel(%arg0: memref<64x20xf32, #tpu.memory_space<vmem>>, %arg1: memref<20x64xf32, #tpu.memory_space<vmem>>, %arg2: memref<8x64xf32, #tpu.memory_space<vmem>>, %arg3: memref<4x8x8xf32, #tpu.memory_space<vmem>>, %arg4: memref<17x19xf32, #tpu.memory_space<vmem>>, %arg5: memref<2x19xf32, #tpu.memory_space<vmem>>) attributes {dimension_semantics = [], scalar_prefetch = 0 : i64, scratch_operands = 0 : i64, tpu.core_type = #tpu.core_type<tc>} {
    %c0 = arith.constant 0 : index
    %c0_0 = arith.constant 0 : index
    %0 = vector.load %arg0[%c0, %c0_0] : memref<64x20xf32, #tpu.memory_space<vmem>>, vector<64x20xf32>
    %c0_1 = arith.constant 0 : index
    %c0_2 = arith.constant 0 : index
    %1 = vector.load %arg1[%c0_1, %c0_2] : memref<20x64xf32, #tpu.memory_space<vmem>>, vector<20x64xf32>
    %cst = arith.constant dense<0.000000e+00> : vector<64x64xf32>
    %2 = tpu.matmul %0, %1, %cst {dimension_numbers = #tpu.dot_dimension_numbers<[1], [0], [0], [1], [0, 0, 1, 1], [], []>} : vector<64x20xf32>, vector<20x64xf32>, vector<64x64xf32> -> vector<64x64xf32>
    %c0_3 = arith.constant 0 : index
    %c0_4 = arith.constant 0 : index
    %3 = vector.load %arg2[%c0_3, %c0_4] : memref<8x64xf32, #tpu.memory_space<vmem>>, vector<8x64xf32>
    %c0_5 = arith.constant 0 : index
    %c0_6 = arith.constant 0 : index
    %4 = vector.load %arg4[%c0_5, %c0_6] : memref<17x19xf32, #tpu.memory_space<vmem>>, vector<17x19xf32>
    %5 = vector.extract_strided_slice %3 {offsets = [0, 0], sizes = [1, 32], strides = [1, 1]} : vector<8x64xf32> to vector<1x32xf32>
    %6 = vector.shape_cast %5 : vector<1x32xf32> to vector<1x32xf32>
    %7 = vector.broadcast %6 : vector<1x32xf32> to vector<8x32xf32>
    %8 = vector.extract_strided_slice %3 {offsets = [1, 0], sizes = [1, 32], strides = [1, 1]} : vector<8x64xf32> to vector<1x32xf32>
    %9 = vector.shape_cast %8 : vector<1x32xf32> to vector<1x32xf32>
    %10 = vector.broadcast %9 : vector<1x32xf32> to vector<8x32xf32>
    %11 = vector.extract_strided_slice %3 {offsets = [2, 0], sizes = [1, 32], strides = [1, 1]} : vector<8x64xf32> to vector<1x32xf32>
    %12 = vector.shape_cast %11 : vector<1x32xf32> to vector<1x32xf32>
    %13 = vector.broadcast %12 : vector<1x32xf32> to vector<8x32xf32>
    %14 = vector.extract_strided_slice %3 {offsets = [3, 0], sizes = [1, 32], strides = [1, 1]} : vector<8x64xf32> to vector<1x32xf32>
    %15 = vector.shape_cast %14 : vector<1x32xf32> to vector<1x32xf32>
    %16 = vector.broadcast %15 : vector<1x32xf32> to vector<8x32xf32>
    %17 = vector.extract_strided_slice %3 {offsets = [4, 0], sizes = [1, 32], strides = [1, 1]} : vector<8x64xf32> to vector<1x32xf32>
    %18 = vector.shape_cast %17 : vector<1x32xf32> to vector<1x32xf32>
    %19 = vector.broadcast %18 : vector<1x32xf32> to vector<8x32xf32>
    %20 = vector.extract_strided_slice %3 {offsets = [5, 0], sizes = [1, 32], strides = [1, 1]} : vector<8x64xf32> to vector<1x32xf32>
    %21 = vector.shape_cast %20 : vector<1x32xf32> to vector<1x32xf32>
    %22 = vector.broadcast %21 : vector<1x32xf32> to vector<8x32xf32>
    %23 = vector.extract_strided_slice %3 {offsets = [6, 0], sizes = [1, 32], strides = [1, 1]} : vector<8x64xf32> to vector<1x32xf32>
    %24 = vector.shape_cast %23 : vector<1x32xf32> to vector<1x32xf32>
    %25 = vector.broadcast %24 : vector<1x32xf32> to vector<8x32xf32>
    %26 = vector.extract_strided_slice %3 {offsets = [7, 0], sizes = [1, 32], strides = [1, 1]} : vector<8x64xf32> to vector<1x32xf32>
    %27 = vector.shape_cast %26 : vector<1x32xf32> to vector<1x32xf32>
    %28 = vector.broadcast %27 : vector<1x32xf32> to vector<8x32xf32>
    %29 = vector.extract_strided_slice %3 {offsets = [0, 32], sizes = [1, 32], strides = [1, 1]} : vector<8x64xf32> to vector<1x32xf32>
    %30 = vector.extract_strided_slice %3 {offsets = [1, 32], sizes = [1, 32], strides = [1, 1]} : vector<8x64xf32> to vector<1x32xf32>
    %31 = vector.extract_strided_slice %3 {offsets = [2, 32], sizes = [1, 32], strides = [1, 1]} : vector<8x64xf32> to vector<1x32xf32>
    %32 = vector.extract_strided_slice %3 {offsets = [3, 32], sizes = [1, 32], strides = [1, 1]} : vector<8x64xf32> to vector<1x32xf32>
    %33 = vector.extract_strided_slice %3 {offsets = [4, 32], sizes = [1, 32], strides = [1, 1]} : vector<8x64xf32> to vector<1x32xf32>
    %34 = vector.extract_strided_slice %3 {offsets = [5, 32], sizes = [1, 32], strides = [1, 1]} : vector<8x64xf32> to vector<1x32xf32>
    %35 = vector.extract_strided_slice %3 {offsets = [6, 32], sizes = [1, 32], strides = [1, 1]} : vector<8x64xf32> to vector<1x32xf32>
    %36 = vector.extract_strided_slice %3 {offsets = [7, 32], sizes = [1, 32], strides = [1, 1]} : vector<8x64xf32> to vector<1x32xf32>
    %37 = vector.extract_strided_slice %4 {offsets = [0, 0], sizes = [1, 19], strides = [1, 1]} : vector<17x19xf32> to vector<1x19xf32>
    %38 = vector.extract_strided_slice %4 {offsets = [1, 0], sizes = [1, 19], strides = [1, 1]} : vector<17x19xf32> to vector<1x19xf32>
    %39 = vector.extract_strided_slice %4 {offsets = [2, 0], sizes = [1, 19], strides = [1, 1]} : vector<17x19xf32> to vector<1x19xf32>
    %40 = vector.extract_strided_slice %4 {offsets = [3, 0], sizes = [1, 19], strides = [1, 1]} : vector<17x19xf32> to vector<1x19xf32>
    %41 = vector.extract_strided_slice %4 {offsets = [4, 0], sizes = [1, 19], strides = [1, 1]} : vector<17x19xf32> to vector<1x19xf32>
    %42 = vector.extract_strided_slice %4 {offsets = [5, 0], sizes = [1, 19], strides = [1, 1]} : vector<17x19xf32> to vector<1x19xf32>
    %43 = vector.extract_strided_slice %4 {offsets = [6, 0], sizes = [1, 19], strides = [1, 1]} : vector<17x19xf32> to vector<1x19xf32>
    %44 = vector.extract_strided_slice %4 {offsets = [7, 0], sizes = [1, 19], strides = [1, 1]} : vector<17x19xf32> to vector<1x19xf32>
    %45 = vector.extract_strided_slice %4 {offsets = [8, 0], sizes = [1, 19], strides = [1, 1]} : vector<17x19xf32> to vector<1x19xf32>
    %46 = vector.extract_strided_slice %4 {offsets = [9, 0], sizes = [1, 19], strides = [1, 1]} : vector<17x19xf32> to vector<1x19xf32>
    %47 = vector.extract_strided_slice %4 {offsets = [10, 0], sizes = [1, 19], strides = [1, 1]} : vector<17x19xf32> to vector<1x19xf32>
    %48 = vector.extract_strided_slice %4 {offsets = [11, 0], sizes = [1, 19], strides = [1, 1]} : vector<17x19xf32> to vector<1x19xf32>
    %49 = vector.extract_strided_slice %4 {offsets = [12, 0], sizes = [1, 19], strides = [1, 1]} : vector<17x19xf32> to vector<1x19xf32>
    %50 = vector.extract_strided_slice %4 {offsets = [13, 0], sizes = [1, 19], strides = [1, 1]} : vector<17x19xf32> to vector<1x19xf32>
    %51 = vector.extract_strided_slice %4 {offsets = [14, 0], sizes = [1, 19], strides = [1, 1]} : vector<17x19xf32> to vector<1x19xf32>
    %52 = vector.extract_strided_slice %4 {offsets = [15, 0], sizes = [1, 19], strides = [1, 1]} : vector<17x19xf32> to vector<1x19xf32>
    %53 = vector.extract_strided_slice %4 {offsets = [16, 0], sizes = [1, 19], strides = [1, 1]} : vector<17x19xf32> to vector<1x19xf32>
    %c0_7 = arith.constant 0 : index
    %c0_8 = arith.constant 0 : index
    %c0_9 = arith.constant 0 : index
    %54 = vector.load %arg3[%c0_7, %c0_8, %c0_9] : memref<4x8x8xf32, #tpu.memory_space<vmem>>, vector<1x8x8xf32>
    %55 = vector.shape_cast %54 : vector<1x8x8xf32> to vector<8x8xf32>
    %c2 = arith.constant 2 : index
    %c0_10 = arith.constant 0 : index
    %c0_11 = arith.constant 0 : index
    %56 = vector.load %arg3[%c2, %c0_10, %c0_11] : memref<4x8x8xf32, #tpu.memory_space<vmem>>, vector<1x8x8xf32>
    %57 = vector.shape_cast %56 : vector<1x8x8xf32> to vector<8x8xf32>
    %58 = vector.extract_strided_slice %2 {offsets = [0, 0], sizes = [8, 32], strides = [1, 1]} : vector<64x64xf32> to vector<8x32xf32>
    %59 = vector.extract_strided_slice %55 {offsets = [0, 0], sizes = [8, 1], strides = [1, 1]} : vector<8x8xf32> to vector<8x1xf32>
    %60 = vector.broadcast %59 : vector<8x1xf32> to vector<8x32xf32>
    %61 = arith.mulf %60, %7 : vector<8x32xf32>
    %62 = vector.extract_strided_slice %55 {offsets = [0, 1], sizes = [8, 1], strides = [1, 1]} : vector<8x8xf32> to vector<8x1xf32>
    %63 = vector.broadcast %62 : vector<8x1xf32> to vector<8x32xf32>
    %64 = arith.mulf %63, %10 : vector<8x32xf32>
    %65 = vector.extract_strided_slice %55 {offsets = [0, 2], sizes = [8, 1], strides = [1, 1]} : vector<8x8xf32> to vector<8x1xf32>
    %66 = vector.broadcast %65 : vector<8x1xf32> to vector<8x32xf32>
    %67 = arith.mulf %66, %13 : vector<8x32xf32>
    %68 = vector.extract_strided_slice %55 {offsets = [0, 3], sizes = [8, 1], strides = [1, 1]} : vector<8x8xf32> to vector<8x1xf32>
    %69 = vector.broadcast %68 : vector<8x1xf32> to vector<8x32xf32>
    %70 = arith.mulf %69, %16 : vector<8x32xf32>
    %71 = vector.extract_strided_slice %55 {offsets = [0, 4], sizes = [8, 1], strides = [1, 1]} : vector<8x8xf32> to vector<8x1xf32>
    %72 = vector.broadcast %71 : vector<8x1xf32> to vector<8x32xf32>
    %73 = arith.mulf %72, %19 : vector<8x32xf32>
    %74 = vector.extract_strided_slice %55 {offsets = [0, 5], sizes = [8, 1], strides = [1, 1]} : vector<8x8xf32> to vector<8x1xf32>
    %75 = vector.broadcast %74 : vector<8x1xf32> to vector<8x32xf32>
    %76 = arith.mulf %75, %22 : vector<8x32xf32>
    %77 = vector.extract_strided_slice %55 {offsets = [0, 6], sizes = [8, 1], strides = [1, 1]} : vector<8x8xf32> to vector<8x1xf32>
    %78 = vector.broadcast %77 : vector<8x1xf32> to vector<8x32xf32>
    %79 = arith.mulf %78, %25 : vector<8x32xf32>
    %80 = vector.extract_strided_slice %55 {offsets = [0, 7], sizes = [8, 1], strides = [1, 1]} : vector<8x8xf32> to vector<8x1xf32>
    %81 = vector.broadcast %80 : vector<8x1xf32> to vector<8x32xf32>
    %82 = arith.mulf %81, %28 : vector<8x32xf32>
    %83 = arith.addf %61, %64 : vector<8x32xf32>
    %84 = arith.addf %67, %70 : vector<8x32xf32>
    %85 = arith.addf %73, %76 : vector<8x32xf32>
    %86 = arith.addf %79, %82 : vector<8x32xf32>
    %87 = arith.addf %83, %84 : vector<8x32xf32>
    %88 = arith.addf %85, %86 : vector<8x32xf32>
    %89 = arith.addf %87, %88 : vector<8x32xf32>
    %90 = arith.addf %58, %89 : vector<8x32xf32>
    %91 = arith.negf %90 : vector<8x32xf32>
    %92 = math.exp %91 : vector<8x32xf32>
    %cst_12 = arith.constant 1.000000e+00 : f32
    %93 = vector.broadcast %cst_12 : f32 to vector<8x32xf32>
    %94 = arith.addf %93, %92 : vector<8x32xf32>
    %95 = arith.divf %93, %94 : vector<8x32xf32>
    %96 = vector.extract_strided_slice %95 {offsets = [0, 0], sizes = [8, 8], strides = [1, 1]} : vector<8x32xf32> to vector<8x8xf32>
    %97 = vector.extract_strided_slice %95 {offsets = [0, 8], sizes = [8, 8], strides = [1, 1]} : vector<8x32xf32> to vector<8x8xf32>
    %98 = vector.extract_strided_slice %95 {offsets = [0, 16], sizes = [8, 8], strides = [1, 1]} : vector<8x32xf32> to vector<8x8xf32>
    %cst_13 = arith.constant 2.000000e+00 : f32
    %99 = vector.broadcast %cst_13 : f32 to vector<8x8xf32>
    %100 = arith.mulf %99, %98 : vector<8x8xf32>
    %cst_14 = arith.constant 1.000000e+00 : f32
    %101 = vector.broadcast %cst_14 : f32 to vector<8x8xf32>
    %102 = arith.subf %100, %101 : vector<8x8xf32>
    %103 = vector.extract_strided_slice %95 {offsets = [0, 24], sizes = [8, 8], strides = [1, 1]} : vector<8x32xf32> to vector<8x8xf32>
    %104 = arith.mulf %97, %57 : vector<8x8xf32>
    %105 = arith.mulf %96, %102 : vector<8x8xf32>
    %106 = arith.addf %104, %105 : vector<8x8xf32>
    %107 = math.tanh %106 : vector<8x8xf32>
    %108 = arith.mulf %103, %107 : vector<8x8xf32>
    %109 = vector.extract_strided_slice %2 {offsets = [8, 0], sizes = [8, 32], strides = [1, 1]} : vector<64x64xf32> to vector<8x32xf32>
    %110 = vector.extract_strided_slice %108 {offsets = [0, 0], sizes = [8, 1], strides = [1, 1]} : vector<8x8xf32> to vector<8x1xf32>
    %111 = vector.broadcast %110 : vector<8x1xf32> to vector<8x32xf32>
    %112 = arith.mulf %111, %7 : vector<8x32xf32>
    %113 = vector.extract_strided_slice %108 {offsets = [0, 1], sizes = [8, 1], strides = [1, 1]} : vector<8x8xf32> to vector<8x1xf32>
    %114 = vector.broadcast %113 : vector<8x1xf32> to vector<8x32xf32>
    %115 = arith.mulf %114, %10 : vector<8x32xf32>
    %116 = vector.extract_strided_slice %108 {offsets = [0, 2], sizes = [8, 1], strides = [1, 1]} : vector<8x8xf32> to vector<8x1xf32>
    %117 = vector.broadcast %116 : vector<8x1xf32> to vector<8x32xf32>
    %118 = arith.mulf %117, %13 : vector<8x32xf32>
    %119 = vector.extract_strided_slice %108 {offsets = [0, 3], sizes = [8, 1], strides = [1, 1]} : vector<8x8xf32> to vector<8x1xf32>
    %120 = vector.broadcast %119 : vector<8x1xf32> to vector<8x32xf32>
    %121 = arith.mulf %120, %16 : vector<8x32xf32>
    %122 = vector.extract_strided_slice %108 {offsets = [0, 4], sizes = [8, 1], strides = [1, 1]} : vector<8x8xf32> to vector<8x1xf32>
    %123 = vector.broadcast %122 : vector<8x1xf32> to vector<8x32xf32>
    %124 = arith.mulf %123, %19 : vector<8x32xf32>
    %125 = vector.extract_strided_slice %108 {offsets = [0, 5], sizes = [8, 1], strides = [1, 1]} : vector<8x8xf32> to vector<8x1xf32>
    %126 = vector.broadcast %125 : vector<8x1xf32> to vector<8x32xf32>
    %127 = arith.mulf %126, %22 : vector<8x32xf32>
    %128 = vector.extract_strided_slice %108 {offsets = [0, 6], sizes = [8, 1], strides = [1, 1]} : vector<8x8xf32> to vector<8x1xf32>
    %129 = vector.broadcast %128 : vector<8x1xf32> to vector<8x32xf32>
    %130 = arith.mulf %129, %25 : vector<8x32xf32>
    %131 = vector.extract_strided_slice %108 {offsets = [0, 7], sizes = [8, 1], strides = [1, 1]} : vector<8x8xf32> to vector<8x1xf32>
    %132 = vector.broadcast %131 : vector<8x1xf32> to vector<8x32xf32>
    %133 = arith.mulf %132, %28 : vector<8x32xf32>
    %134 = arith.addf %112, %115 : vector<8x32xf32>
    %135 = arith.addf %118, %121 : vector<8x32xf32>
    %136 = arith.addf %124, %127 : vector<8x32xf32>
    %137 = arith.addf %130, %133 : vector<8x32xf32>
    %138 = arith.addf %134, %135 : vector<8x32xf32>
    %139 = arith.addf %136, %137 : vector<8x32xf32>
    %140 = arith.addf %138, %139 : vector<8x32xf32>
    %141 = arith.addf %109, %140 : vector<8x32xf32>
    %142 = arith.negf %141 : vector<8x32xf32>
    %143 = math.exp %142 : vector<8x32xf32>
    %cst_15 = arith.constant 1.000000e+00 : f32
    %144 = vector.broadcast %cst_15 : f32 to vector<8x32xf32>
    %145 = arith.addf %144, %143 : vector<8x32xf32>
    %146 = arith.divf %144, %145 : vector<8x32xf32>
    %147 = vector.extract_strided_slice %146 {offsets = [0, 0], sizes = [8, 8], strides = [1, 1]} : vector<8x32xf32> to vector<8x8xf32>
    %148 = vector.extract_strided_slice %146 {offsets = [0, 8], sizes = [8, 8], strides = [1, 1]} : vector<8x32xf32> to vector<8x8xf32>
    %149 = vector.extract_strided_slice %146 {offsets = [0, 16], sizes = [8, 8], strides = [1, 1]} : vector<8x32xf32> to vector<8x8xf32>
    %cst_16 = arith.constant 2.000000e+00 : f32
    %150 = vector.broadcast %cst_16 : f32 to vector<8x8xf32>
    %151 = arith.mulf %150, %149 : vector<8x8xf32>
    %cst_17 = arith.constant 1.000000e+00 : f32
    %152 = vector.broadcast %cst_17 : f32 to vector<8x8xf32>
    %153 = arith.subf %151, %152 : vector<8x8xf32>
    %154 = vector.extract_strided_slice %146 {offsets = [0, 24], sizes = [8, 8], strides = [1, 1]} : vector<8x32xf32> to vector<8x8xf32>
    %155 = arith.mulf %148, %106 : vector<8x8xf32>
    %156 = arith.mulf %147, %153 : vector<8x8xf32>
    %157 = arith.addf %155, %156 : vector<8x8xf32>
    %158 = math.tanh %157 : vector<8x8xf32>
    %159 = arith.mulf %154, %158 : vector<8x8xf32>
    %160 = vector.extract_strided_slice %2 {offsets = [16, 0], sizes = [8, 32], strides = [1, 1]} : vector<64x64xf32> to vector<8x32xf32>
    %161 = vector.extract_strided_slice %159 {offsets = [0, 0], sizes = [8, 1], strides = [1, 1]} : vector<8x8xf32> to vector<8x1xf32>
    %162 = vector.broadcast %161 : vector<8x1xf32> to vector<8x32xf32>
    %163 = arith.mulf %162, %7 : vector<8x32xf32>
    %164 = vector.extract_strided_slice %159 {offsets = [0, 1], sizes = [8, 1], strides = [1, 1]} : vector<8x8xf32> to vector<8x1xf32>
    %165 = vector.broadcast %164 : vector<8x1xf32> to vector<8x32xf32>
    %166 = arith.mulf %165, %10 : vector<8x32xf32>
    %167 = vector.extract_strided_slice %159 {offsets = [0, 2], sizes = [8, 1], strides = [1, 1]} : vector<8x8xf32> to vector<8x1xf32>
    %168 = vector.broadcast %167 : vector<8x1xf32> to vector<8x32xf32>
    %169 = arith.mulf %168, %13 : vector<8x32xf32>
    %170 = vector.extract_strided_slice %159 {offsets = [0, 3], sizes = [8, 1], strides = [1, 1]} : vector<8x8xf32> to vector<8x1xf32>
    %171 = vector.broadcast %170 : vector<8x1xf32> to vector<8x32xf32>
    %172 = arith.mulf %171, %16 : vector<8x32xf32>
    %173 = vector.extract_strided_slice %159 {offsets = [0, 4], sizes = [8, 1], strides = [1, 1]} : vector<8x8xf32> to vector<8x1xf32>
    %174 = vector.broadcast %173 : vector<8x1xf32> to vector<8x32xf32>
    %175 = arith.mulf %174, %19 : vector<8x32xf32>
    %176 = vector.extract_strided_slice %159 {offsets = [0, 5], sizes = [8, 1], strides = [1, 1]} : vector<8x8xf32> to vector<8x1xf32>
    %177 = vector.broadcast %176 : vector<8x1xf32> to vector<8x32xf32>
    %178 = arith.mulf %177, %22 : vector<8x32xf32>
    %179 = vector.extract_strided_slice %159 {offsets = [0, 6], sizes = [8, 1], strides = [1, 1]} : vector<8x8xf32> to vector<8x1xf32>
    %180 = vector.broadcast %179 : vector<8x1xf32> to vector<8x32xf32>
    %181 = arith.mulf %180, %25 : vector<8x32xf32>
    %182 = vector.extract_strided_slice %159 {offsets = [0, 7], sizes = [8, 1], strides = [1, 1]} : vector<8x8xf32> to vector<8x1xf32>
    %183 = vector.broadcast %182 : vector<8x1xf32> to vector<8x32xf32>
    %184 = arith.mulf %183, %28 : vector<8x32xf32>
    %185 = arith.addf %163, %166 : vector<8x32xf32>
    %186 = arith.addf %169, %172 : vector<8x32xf32>
    %187 = arith.addf %175, %178 : vector<8x32xf32>
    %188 = arith.addf %181, %184 : vector<8x32xf32>
    %189 = arith.addf %185, %186 : vector<8x32xf32>
    %190 = arith.addf %187, %188 : vector<8x32xf32>
    %191 = arith.addf %189, %190 : vector<8x32xf32>
    %192 = arith.addf %160, %191 : vector<8x32xf32>
    %193 = arith.negf %192 : vector<8x32xf32>
    %194 = math.exp %193 : vector<8x32xf32>
    %cst_18 = arith.constant 1.000000e+00 : f32
    %195 = vector.broadcast %cst_18 : f32 to vector<8x32xf32>
    %196 = arith.addf %195, %194 : vector<8x32xf32>
    %197 = arith.divf %195, %196 : vector<8x32xf32>
    %198 = vector.extract_strided_slice %197 {offsets = [0, 0], sizes = [8, 8], strides = [1, 1]} : vector<8x32xf32> to vector<8x8xf32>
    %199 = vector.extract_strided_slice %197 {offsets = [0, 8], sizes = [8, 8], strides = [1, 1]} : vector<8x32xf32> to vector<8x8xf32>
    %200 = vector.extract_strided_slice %197 {offsets = [0, 16], sizes = [8, 8], strides = [1, 1]} : vector<8x32xf32> to vector<8x8xf32>
    %cst_19 = arith.constant 2.000000e+00 : f32
    %201 = vector.broadcast %cst_19 : f32 to vector<8x8xf32>
    %202 = arith.mulf %201, %200 : vector<8x8xf32>
    %cst_20 = arith.constant 1.000000e+00 : f32
    %203 = vector.broadcast %cst_20 : f32 to vector<8x8xf32>
    %204 = arith.subf %202, %203 : vector<8x8xf32>
    %205 = vector.extract_strided_slice %197 {offsets = [0, 24], sizes = [8, 8], strides = [1, 1]} : vector<8x32xf32> to vector<8x8xf32>
    %206 = arith.mulf %199, %157 : vector<8x8xf32>
    %207 = arith.mulf %198, %204 : vector<8x8xf32>
    %208 = arith.addf %206, %207 : vector<8x8xf32>
    %209 = math.tanh %208 : vector<8x8xf32>
    %210 = arith.mulf %205, %209 : vector<8x8xf32>
    %211 = vector.extract_strided_slice %2 {offsets = [24, 0], sizes = [8, 32], strides = [1, 1]} : vector<64x64xf32> to vector<8x32xf32>
    %212 = vector.extract_strided_slice %210 {offsets = [0, 0], sizes = [8, 1], strides = [1, 1]} : vector<8x8xf32> to vector<8x1xf32>
    %213 = vector.broadcast %212 : vector<8x1xf32> to vector<8x32xf32>
    %214 = arith.mulf %213, %7 : vector<8x32xf32>
    %215 = vector.extract_strided_slice %210 {offsets = [0, 1], sizes = [8, 1], strides = [1, 1]} : vector<8x8xf32> to vector<8x1xf32>
    %216 = vector.broadcast %215 : vector<8x1xf32> to vector<8x32xf32>
    %217 = arith.mulf %216, %10 : vector<8x32xf32>
    %218 = vector.extract_strided_slice %210 {offsets = [0, 2], sizes = [8, 1], strides = [1, 1]} : vector<8x8xf32> to vector<8x1xf32>
    %219 = vector.broadcast %218 : vector<8x1xf32> to vector<8x32xf32>
    %220 = arith.mulf %219, %13 : vector<8x32xf32>
    %221 = vector.extract_strided_slice %210 {offsets = [0, 3], sizes = [8, 1], strides = [1, 1]} : vector<8x8xf32> to vector<8x1xf32>
    %222 = vector.broadcast %221 : vector<8x1xf32> to vector<8x32xf32>
    %223 = arith.mulf %222, %16 : vector<8x32xf32>
    %224 = vector.extract_strided_slice %210 {offsets = [0, 4], sizes = [8, 1], strides = [1, 1]} : vector<8x8xf32> to vector<8x1xf32>
    %225 = vector.broadcast %224 : vector<8x1xf32> to vector<8x32xf32>
    %226 = arith.mulf %225, %19 : vector<8x32xf32>
    %227 = vector.extract_strided_slice %210 {offsets = [0, 5], sizes = [8, 1], strides = [1, 1]} : vector<8x8xf32> to vector<8x1xf32>
    %228 = vector.broadcast %227 : vector<8x1xf32> to vector<8x32xf32>
    %229 = arith.mulf %228, %22 : vector<8x32xf32>
    %230 = vector.extract_strided_slice %210 {offsets = [0, 6], sizes = [8, 1], strides = [1, 1]} : vector<8x8xf32> to vector<8x1xf32>
    %231 = vector.broadcast %230 : vector<8x1xf32> to vector<8x32xf32>
    %232 = arith.mulf %231, %25 : vector<8x32xf32>
    %233 = vector.extract_strided_slice %210 {offsets = [0, 7], sizes = [8, 1], strides = [1, 1]} : vector<8x8xf32> to vector<8x1xf32>
    %234 = vector.broadcast %233 : vector<8x1xf32> to vector<8x32xf32>
    %235 = arith.mulf %234, %28 : vector<8x32xf32>
    %236 = arith.addf %214, %217 : vector<8x32xf32>
    %237 = arith.addf %220, %223 : vector<8x32xf32>
    %238 = arith.addf %226, %229 : vector<8x32xf32>
    %239 = arith.addf %232, %235 : vector<8x32xf32>
    %240 = arith.addf %236, %237 : vector<8x32xf32>
    %241 = arith.addf %238, %239 : vector<8x32xf32>
    %242 = arith.addf %240, %241 : vector<8x32xf32>
    %243 = arith.addf %211, %242 : vector<8x32xf32>
    %244 = arith.negf %243 : vector<8x32xf32>
    %245 = math.exp %244 : vector<8x32xf32>
    %cst_21 = arith.constant 1.000000e+00 : f32
    %246 = vector.broadcast %cst_21 : f32 to vector<8x32xf32>
    %247 = arith.addf %246, %245 : vector<8x32xf32>
    %248 = arith.divf %246, %247 : vector<8x32xf32>
    %249 = vector.extract_strided_slice %248 {offsets = [0, 0], sizes = [8, 8], strides = [1, 1]} : vector<8x32xf32> to vector<8x8xf32>
    %250 = vector.extract_strided_slice %248 {offsets = [0, 8], sizes = [8, 8], strides = [1, 1]} : vector<8x32xf32> to vector<8x8xf32>
    %251 = vector.extract_strided_slice %248 {offsets = [0, 16], sizes = [8, 8], strides = [1, 1]} : vector<8x32xf32> to vector<8x8xf32>
    %cst_22 = arith.constant 2.000000e+00 : f32
    %252 = vector.broadcast %cst_22 : f32 to vector<8x8xf32>
    %253 = arith.mulf %252, %251 : vector<8x8xf32>
    %cst_23 = arith.constant 1.000000e+00 : f32
    %254 = vector.broadcast %cst_23 : f32 to vector<8x8xf32>
    %255 = arith.subf %253, %254 : vector<8x8xf32>
    %256 = vector.extract_strided_slice %248 {offsets = [0, 24], sizes = [8, 8], strides = [1, 1]} : vector<8x32xf32> to vector<8x8xf32>
    %257 = arith.mulf %250, %208 : vector<8x8xf32>
    %258 = arith.mulf %249, %255 : vector<8x8xf32>
    %259 = arith.addf %257, %258 : vector<8x8xf32>
    %260 = math.tanh %259 : vector<8x8xf32>
    %261 = arith.mulf %256, %260 : vector<8x8xf32>
    %262 = vector.extract_strided_slice %2 {offsets = [32, 0], sizes = [8, 32], strides = [1, 1]} : vector<64x64xf32> to vector<8x32xf32>
    %263 = vector.extract_strided_slice %261 {offsets = [0, 0], sizes = [8, 1], strides = [1, 1]} : vector<8x8xf32> to vector<8x1xf32>
    %264 = vector.broadcast %263 : vector<8x1xf32> to vector<8x32xf32>
    %265 = arith.mulf %264, %7 : vector<8x32xf32>
    %266 = vector.extract_strided_slice %261 {offsets = [0, 1], sizes = [8, 1], strides = [1, 1]} : vector<8x8xf32> to vector<8x1xf32>
    %267 = vector.broadcast %266 : vector<8x1xf32> to vector<8x32xf32>
    %268 = arith.mulf %267, %10 : vector<8x32xf32>
    %269 = vector.extract_strided_slice %261 {offsets = [0, 2], sizes = [8, 1], strides = [1, 1]} : vector<8x8xf32> to vector<8x1xf32>
    %270 = vector.broadcast %269 : vector<8x1xf32> to vector<8x32xf32>
    %271 = arith.mulf %270, %13 : vector<8x32xf32>
    %272 = vector.extract_strided_slice %261 {offsets = [0, 3], sizes = [8, 1], strides = [1, 1]} : vector<8x8xf32> to vector<8x1xf32>
    %273 = vector.broadcast %272 : vector<8x1xf32> to vector<8x32xf32>
    %274 = arith.mulf %273, %16 : vector<8x32xf32>
    %275 = vector.extract_strided_slice %261 {offsets = [0, 4], sizes = [8, 1], strides = [1, 1]} : vector<8x8xf32> to vector<8x1xf32>
    %276 = vector.broadcast %275 : vector<8x1xf32> to vector<8x32xf32>
    %277 = arith.mulf %276, %19 : vector<8x32xf32>
    %278 = vector.extract_strided_slice %261 {offsets = [0, 5], sizes = [8, 1], strides = [1, 1]} : vector<8x8xf32> to vector<8x1xf32>
    %279 = vector.broadcast %278 : vector<8x1xf32> to vector<8x32xf32>
    %280 = arith.mulf %279, %22 : vector<8x32xf32>
    %281 = vector.extract_strided_slice %261 {offsets = [0, 6], sizes = [8, 1], strides = [1, 1]} : vector<8x8xf32> to vector<8x1xf32>
    %282 = vector.broadcast %281 : vector<8x1xf32> to vector<8x32xf32>
    %283 = arith.mulf %282, %25 : vector<8x32xf32>
    %284 = vector.extract_strided_slice %261 {offsets = [0, 7], sizes = [8, 1], strides = [1, 1]} : vector<8x8xf32> to vector<8x1xf32>
    %285 = vector.broadcast %284 : vector<8x1xf32> to vector<8x32xf32>
    %286 = arith.mulf %285, %28 : vector<8x32xf32>
    %287 = arith.addf %265, %268 : vector<8x32xf32>
    %288 = arith.addf %271, %274 : vector<8x32xf32>
    %289 = arith.addf %277, %280 : vector<8x32xf32>
    %290 = arith.addf %283, %286 : vector<8x32xf32>
    %291 = arith.addf %287, %288 : vector<8x32xf32>
    %292 = arith.addf %289, %290 : vector<8x32xf32>
    %293 = arith.addf %291, %292 : vector<8x32xf32>
    %294 = arith.addf %262, %293 : vector<8x32xf32>
    %295 = arith.negf %294 : vector<8x32xf32>
    %296 = math.exp %295 : vector<8x32xf32>
    %cst_24 = arith.constant 1.000000e+00 : f32
    %297 = vector.broadcast %cst_24 : f32 to vector<8x32xf32>
    %298 = arith.addf %297, %296 : vector<8x32xf32>
    %299 = arith.divf %297, %298 : vector<8x32xf32>
    %300 = vector.extract_strided_slice %299 {offsets = [0, 0], sizes = [8, 8], strides = [1, 1]} : vector<8x32xf32> to vector<8x8xf32>
    %301 = vector.extract_strided_slice %299 {offsets = [0, 8], sizes = [8, 8], strides = [1, 1]} : vector<8x32xf32> to vector<8x8xf32>
    %302 = vector.extract_strided_slice %299 {offsets = [0, 16], sizes = [8, 8], strides = [1, 1]} : vector<8x32xf32> to vector<8x8xf32>
    %cst_25 = arith.constant 2.000000e+00 : f32
    %303 = vector.broadcast %cst_25 : f32 to vector<8x8xf32>
    %304 = arith.mulf %303, %302 : vector<8x8xf32>
    %cst_26 = arith.constant 1.000000e+00 : f32
    %305 = vector.broadcast %cst_26 : f32 to vector<8x8xf32>
    %306 = arith.subf %304, %305 : vector<8x8xf32>
    %307 = vector.extract_strided_slice %299 {offsets = [0, 24], sizes = [8, 8], strides = [1, 1]} : vector<8x32xf32> to vector<8x8xf32>
    %308 = arith.mulf %301, %259 : vector<8x8xf32>
    %309 = arith.mulf %300, %306 : vector<8x8xf32>
    %310 = arith.addf %308, %309 : vector<8x8xf32>
    %311 = math.tanh %310 : vector<8x8xf32>
    %312 = arith.mulf %307, %311 : vector<8x8xf32>
    %313 = vector.extract_strided_slice %2 {offsets = [40, 0], sizes = [8, 32], strides = [1, 1]} : vector<64x64xf32> to vector<8x32xf32>
    %314 = vector.extract_strided_slice %312 {offsets = [0, 0], sizes = [8, 1], strides = [1, 1]} : vector<8x8xf32> to vector<8x1xf32>
    %315 = vector.broadcast %314 : vector<8x1xf32> to vector<8x32xf32>
    %316 = arith.mulf %315, %7 : vector<8x32xf32>
    %317 = vector.extract_strided_slice %312 {offsets = [0, 1], sizes = [8, 1], strides = [1, 1]} : vector<8x8xf32> to vector<8x1xf32>
    %318 = vector.broadcast %317 : vector<8x1xf32> to vector<8x32xf32>
    %319 = arith.mulf %318, %10 : vector<8x32xf32>
    %320 = vector.extract_strided_slice %312 {offsets = [0, 2], sizes = [8, 1], strides = [1, 1]} : vector<8x8xf32> to vector<8x1xf32>
    %321 = vector.broadcast %320 : vector<8x1xf32> to vector<8x32xf32>
    %322 = arith.mulf %321, %13 : vector<8x32xf32>
    %323 = vector.extract_strided_slice %312 {offsets = [0, 3], sizes = [8, 1], strides = [1, 1]} : vector<8x8xf32> to vector<8x1xf32>
    %324 = vector.broadcast %323 : vector<8x1xf32> to vector<8x32xf32>
    %325 = arith.mulf %324, %16 : vector<8x32xf32>
    %326 = vector.extract_strided_slice %312 {offsets = [0, 4], sizes = [8, 1], strides = [1, 1]} : vector<8x8xf32> to vector<8x1xf32>
    %327 = vector.broadcast %326 : vector<8x1xf32> to vector<8x32xf32>
    %328 = arith.mulf %327, %19 : vector<8x32xf32>
    %329 = vector.extract_strided_slice %312 {offsets = [0, 5], sizes = [8, 1], strides = [1, 1]} : vector<8x8xf32> to vector<8x1xf32>
    %330 = vector.broadcast %329 : vector<8x1xf32> to vector<8x32xf32>
    %331 = arith.mulf %330, %22 : vector<8x32xf32>
    %332 = vector.extract_strided_slice %312 {offsets = [0, 6], sizes = [8, 1], strides = [1, 1]} : vector<8x8xf32> to vector<8x1xf32>
    %333 = vector.broadcast %332 : vector<8x1xf32> to vector<8x32xf32>
    %334 = arith.mulf %333, %25 : vector<8x32xf32>
    %335 = vector.extract_strided_slice %312 {offsets = [0, 7], sizes = [8, 1], strides = [1, 1]} : vector<8x8xf32> to vector<8x1xf32>
    %336 = vector.broadcast %335 : vector<8x1xf32> to vector<8x32xf32>
    %337 = arith.mulf %336, %28 : vector<8x32xf32>
    %338 = arith.addf %316, %319 : vector<8x32xf32>
    %339 = arith.addf %322, %325 : vector<8x32xf32>
    %340 = arith.addf %328, %331 : vector<8x32xf32>
    %341 = arith.addf %334, %337 : vector<8x32xf32>
    %342 = arith.addf %338, %339 : vector<8x32xf32>
    %343 = arith.addf %340, %341 : vector<8x32xf32>
    %344 = arith.addf %342, %343 : vector<8x32xf32>
    %345 = arith.addf %313, %344 : vector<8x32xf32>
    %346 = arith.negf %345 : vector<8x32xf32>
    %347 = math.exp %346 : vector<8x32xf32>
    %cst_27 = arith.constant 1.000000e+00 : f32
    %348 = vector.broadcast %cst_27 : f32 to vector<8x32xf32>
    %349 = arith.addf %348, %347 : vector<8x32xf32>
    %350 = arith.divf %348, %349 : vector<8x32xf32>
    %351 = vector.extract_strided_slice %350 {offsets = [0, 0], sizes = [8, 8], strides = [1, 1]} : vector<8x32xf32> to vector<8x8xf32>
    %352 = vector.extract_strided_slice %350 {offsets = [0, 8], sizes = [8, 8], strides = [1, 1]} : vector<8x32xf32> to vector<8x8xf32>
    %353 = vector.extract_strided_slice %350 {offsets = [0, 16], sizes = [8, 8], strides = [1, 1]} : vector<8x32xf32> to vector<8x8xf32>
    %cst_28 = arith.constant 2.000000e+00 : f32
    %354 = vector.broadcast %cst_28 : f32 to vector<8x8xf32>
    %355 = arith.mulf %354, %353 : vector<8x8xf32>
    %cst_29 = arith.constant 1.000000e+00 : f32
    %356 = vector.broadcast %cst_29 : f32 to vector<8x8xf32>
    %357 = arith.subf %355, %356 : vector<8x8xf32>
    %358 = vector.extract_strided_slice %350 {offsets = [0, 24], sizes = [8, 8], strides = [1, 1]} : vector<8x32xf32> to vector<8x8xf32>
    %359 = arith.mulf %352, %310 : vector<8x8xf32>
    %360 = arith.mulf %351, %357 : vector<8x8xf32>
    %361 = arith.addf %359, %360 : vector<8x8xf32>
    %362 = math.tanh %361 : vector<8x8xf32>
    %363 = arith.mulf %358, %362 : vector<8x8xf32>
    %364 = vector.extract_strided_slice %2 {offsets = [48, 0], sizes = [8, 32], strides = [1, 1]} : vector<64x64xf32> to vector<8x32xf32>
    %365 = vector.extract_strided_slice %363 {offsets = [0, 0], sizes = [8, 1], strides = [1, 1]} : vector<8x8xf32> to vector<8x1xf32>
    %366 = vector.broadcast %365 : vector<8x1xf32> to vector<8x32xf32>
    %367 = arith.mulf %366, %7 : vector<8x32xf32>
    %368 = vector.extract_strided_slice %363 {offsets = [0, 1], sizes = [8, 1], strides = [1, 1]} : vector<8x8xf32> to vector<8x1xf32>
    %369 = vector.broadcast %368 : vector<8x1xf32> to vector<8x32xf32>
    %370 = arith.mulf %369, %10 : vector<8x32xf32>
    %371 = vector.extract_strided_slice %363 {offsets = [0, 2], sizes = [8, 1], strides = [1, 1]} : vector<8x8xf32> to vector<8x1xf32>
    %372 = vector.broadcast %371 : vector<8x1xf32> to vector<8x32xf32>
    %373 = arith.mulf %372, %13 : vector<8x32xf32>
    %374 = vector.extract_strided_slice %363 {offsets = [0, 3], sizes = [8, 1], strides = [1, 1]} : vector<8x8xf32> to vector<8x1xf32>
    %375 = vector.broadcast %374 : vector<8x1xf32> to vector<8x32xf32>
    %376 = arith.mulf %375, %16 : vector<8x32xf32>
    %377 = vector.extract_strided_slice %363 {offsets = [0, 4], sizes = [8, 1], strides = [1, 1]} : vector<8x8xf32> to vector<8x1xf32>
    %378 = vector.broadcast %377 : vector<8x1xf32> to vector<8x32xf32>
    %379 = arith.mulf %378, %19 : vector<8x32xf32>
    %380 = vector.extract_strided_slice %363 {offsets = [0, 5], sizes = [8, 1], strides = [1, 1]} : vector<8x8xf32> to vector<8x1xf32>
    %381 = vector.broadcast %380 : vector<8x1xf32> to vector<8x32xf32>
    %382 = arith.mulf %381, %22 : vector<8x32xf32>
    %383 = vector.extract_strided_slice %363 {offsets = [0, 6], sizes = [8, 1], strides = [1, 1]} : vector<8x8xf32> to vector<8x1xf32>
    %384 = vector.broadcast %383 : vector<8x1xf32> to vector<8x32xf32>
    %385 = arith.mulf %384, %25 : vector<8x32xf32>
    %386 = vector.extract_strided_slice %363 {offsets = [0, 7], sizes = [8, 1], strides = [1, 1]} : vector<8x8xf32> to vector<8x1xf32>
    %387 = vector.broadcast %386 : vector<8x1xf32> to vector<8x32xf32>
    %388 = arith.mulf %387, %28 : vector<8x32xf32>
    %389 = arith.addf %367, %370 : vector<8x32xf32>
    %390 = arith.addf %373, %376 : vector<8x32xf32>
    %391 = arith.addf %379, %382 : vector<8x32xf32>
    %392 = arith.addf %385, %388 : vector<8x32xf32>
    %393 = arith.addf %389, %390 : vector<8x32xf32>
    %394 = arith.addf %391, %392 : vector<8x32xf32>
    %395 = arith.addf %393, %394 : vector<8x32xf32>
    %396 = arith.addf %364, %395 : vector<8x32xf32>
    %397 = arith.negf %396 : vector<8x32xf32>
    %398 = math.exp %397 : vector<8x32xf32>
    %cst_30 = arith.constant 1.000000e+00 : f32
    %399 = vector.broadcast %cst_30 : f32 to vector<8x32xf32>
    %400 = arith.addf %399, %398 : vector<8x32xf32>
    %401 = arith.divf %399, %400 : vector<8x32xf32>
    %402 = vector.extract_strided_slice %401 {offsets = [0, 0], sizes = [8, 8], strides = [1, 1]} : vector<8x32xf32> to vector<8x8xf32>
    %403 = vector.extract_strided_slice %401 {offsets = [0, 8], sizes = [8, 8], strides = [1, 1]} : vector<8x32xf32> to vector<8x8xf32>
    %404 = vector.extract_strided_slice %401 {offsets = [0, 16], sizes = [8, 8], strides = [1, 1]} : vector<8x32xf32> to vector<8x8xf32>
    %cst_31 = arith.constant 2.000000e+00 : f32
    %405 = vector.broadcast %cst_31 : f32 to vector<8x8xf32>
    %406 = arith.mulf %405, %404 : vector<8x8xf32>
    %cst_32 = arith.constant 1.000000e+00 : f32
    %407 = vector.broadcast %cst_32 : f32 to vector<8x8xf32>
    %408 = arith.subf %406, %407 : vector<8x8xf32>
    %409 = vector.extract_strided_slice %401 {offsets = [0, 24], sizes = [8, 8], strides = [1, 1]} : vector<8x32xf32> to vector<8x8xf32>
    %410 = arith.mulf %403, %361 : vector<8x8xf32>
    %411 = arith.mulf %402, %408 : vector<8x8xf32>
    %412 = arith.addf %410, %411 : vector<8x8xf32>
    %413 = math.tanh %412 : vector<8x8xf32>
    %414 = arith.mulf %409, %413 : vector<8x8xf32>
    %415 = vector.extract_strided_slice %2 {offsets = [56, 0], sizes = [8, 32], strides = [1, 1]} : vector<64x64xf32> to vector<8x32xf32>
    %416 = vector.extract_strided_slice %414 {offsets = [0, 0], sizes = [8, 1], strides = [1, 1]} : vector<8x8xf32> to vector<8x1xf32>
    %417 = vector.broadcast %416 : vector<8x1xf32> to vector<8x32xf32>
    %418 = arith.mulf %417, %7 : vector<8x32xf32>
    %419 = vector.extract_strided_slice %414 {offsets = [0, 1], sizes = [8, 1], strides = [1, 1]} : vector<8x8xf32> to vector<8x1xf32>
    %420 = vector.broadcast %419 : vector<8x1xf32> to vector<8x32xf32>
    %421 = arith.mulf %420, %10 : vector<8x32xf32>
    %422 = vector.extract_strided_slice %414 {offsets = [0, 2], sizes = [8, 1], strides = [1, 1]} : vector<8x8xf32> to vector<8x1xf32>
    %423 = vector.broadcast %422 : vector<8x1xf32> to vector<8x32xf32>
    %424 = arith.mulf %423, %13 : vector<8x32xf32>
    %425 = vector.extract_strided_slice %414 {offsets = [0, 3], sizes = [8, 1], strides = [1, 1]} : vector<8x8xf32> to vector<8x1xf32>
    %426 = vector.broadcast %425 : vector<8x1xf32> to vector<8x32xf32>
    %427 = arith.mulf %426, %16 : vector<8x32xf32>
    %428 = vector.extract_strided_slice %414 {offsets = [0, 4], sizes = [8, 1], strides = [1, 1]} : vector<8x8xf32> to vector<8x1xf32>
    %429 = vector.broadcast %428 : vector<8x1xf32> to vector<8x32xf32>
    %430 = arith.mulf %429, %19 : vector<8x32xf32>
    %431 = vector.extract_strided_slice %414 {offsets = [0, 5], sizes = [8, 1], strides = [1, 1]} : vector<8x8xf32> to vector<8x1xf32>
    %432 = vector.broadcast %431 : vector<8x1xf32> to vector<8x32xf32>
    %433 = arith.mulf %432, %22 : vector<8x32xf32>
    %434 = vector.extract_strided_slice %414 {offsets = [0, 6], sizes = [8, 1], strides = [1, 1]} : vector<8x8xf32> to vector<8x1xf32>
    %435 = vector.broadcast %434 : vector<8x1xf32> to vector<8x32xf32>
    %436 = arith.mulf %435, %25 : vector<8x32xf32>
    %437 = vector.extract_strided_slice %414 {offsets = [0, 7], sizes = [8, 1], strides = [1, 1]} : vector<8x8xf32> to vector<8x1xf32>
    %438 = vector.broadcast %437 : vector<8x1xf32> to vector<8x32xf32>
    %439 = arith.mulf %438, %28 : vector<8x32xf32>
    %440 = arith.addf %418, %421 : vector<8x32xf32>
    %441 = arith.addf %424, %427 : vector<8x32xf32>
    %442 = arith.addf %430, %433 : vector<8x32xf32>
    %443 = arith.addf %436, %439 : vector<8x32xf32>
    %444 = arith.addf %440, %441 : vector<8x32xf32>
    %445 = arith.addf %442, %443 : vector<8x32xf32>
    %446 = arith.addf %444, %445 : vector<8x32xf32>
    %447 = arith.addf %415, %446 : vector<8x32xf32>
    %448 = arith.negf %447 : vector<8x32xf32>
    %449 = math.exp %448 : vector<8x32xf32>
    %cst_33 = arith.constant 1.000000e+00 : f32
    %450 = vector.broadcast %cst_33 : f32 to vector<8x32xf32>
    %451 = arith.addf %450, %449 : vector<8x32xf32>
    %452 = arith.divf %450, %451 : vector<8x32xf32>
    %453 = vector.extract_strided_slice %452 {offsets = [0, 0], sizes = [8, 8], strides = [1, 1]} : vector<8x32xf32> to vector<8x8xf32>
    %454 = vector.extract_strided_slice %452 {offsets = [0, 8], sizes = [8, 8], strides = [1, 1]} : vector<8x32xf32> to vector<8x8xf32>
    %455 = vector.extract_strided_slice %452 {offsets = [0, 16], sizes = [8, 8], strides = [1, 1]} : vector<8x32xf32> to vector<8x8xf32>
    %cst_34 = arith.constant 2.000000e+00 : f32
    %456 = vector.broadcast %cst_34 : f32 to vector<8x8xf32>
    %457 = arith.mulf %456, %455 : vector<8x8xf32>
    %cst_35 = arith.constant 1.000000e+00 : f32
    %458 = vector.broadcast %cst_35 : f32 to vector<8x8xf32>
    %459 = arith.subf %457, %458 : vector<8x8xf32>
    %460 = vector.extract_strided_slice %452 {offsets = [0, 24], sizes = [8, 8], strides = [1, 1]} : vector<8x32xf32> to vector<8x8xf32>
    %461 = arith.mulf %454, %412 : vector<8x8xf32>
    %462 = arith.mulf %453, %459 : vector<8x8xf32>
    %463 = arith.addf %461, %462 : vector<8x8xf32>
    %464 = math.tanh %463 : vector<8x8xf32>
    %465 = arith.mulf %460, %464 : vector<8x8xf32>
    %466 = vector.extract_strided_slice %2 {offsets = [56, 32], sizes = [8, 32], strides = [1, 1]} : vector<64x64xf32> to vector<8x32xf32>
    %c1 = arith.constant 1 : index
    %c0_36 = arith.constant 0 : index
    %c0_37 = arith.constant 0 : index
    %467 = vector.load %arg3[%c1, %c0_36, %c0_37] : memref<4x8x8xf32, #tpu.memory_space<vmem>>, vector<1x8x8xf32>
    %468 = vector.shape_cast %467 : vector<1x8x8xf32> to vector<8x8xf32>
    %c3 = arith.constant 3 : index
    %c0_38 = arith.constant 0 : index
    %c0_39 = arith.constant 0 : index
    %469 = vector.load %arg3[%c3, %c0_38, %c0_39] : memref<4x8x8xf32, #tpu.memory_space<vmem>>, vector<1x8x8xf32>
    %470 = vector.shape_cast %469 : vector<1x8x8xf32> to vector<8x8xf32>
    %471 = vector.extract_strided_slice %468 {offsets = [0, 0], sizes = [8, 1], strides = [1, 1]} : vector<8x8xf32> to vector<8x1xf32>
    %472 = vector.broadcast %471 : vector<8x1xf32> to vector<8x32xf32>
    %473 = vector.broadcast %29 : vector<1x32xf32> to vector<8x32xf32>
    %474 = arith.mulf %472, %473 : vector<8x32xf32>
    %475 = vector.extract_strided_slice %468 {offsets = [0, 1], sizes = [8, 1], strides = [1, 1]} : vector<8x8xf32> to vector<8x1xf32>
    %476 = vector.broadcast %475 : vector<8x1xf32> to vector<8x32xf32>
    %477 = vector.broadcast %30 : vector<1x32xf32> to vector<8x32xf32>
    %478 = arith.mulf %476, %477 : vector<8x32xf32>
    %479 = vector.extract_strided_slice %468 {offsets = [0, 2], sizes = [8, 1], strides = [1, 1]} : vector<8x8xf32> to vector<8x1xf32>
    %480 = vector.broadcast %479 : vector<8x1xf32> to vector<8x32xf32>
    %481 = vector.broadcast %31 : vector<1x32xf32> to vector<8x32xf32>
    %482 = arith.mulf %480, %481 : vector<8x32xf32>
    %483 = vector.extract_strided_slice %468 {offsets = [0, 3], sizes = [8, 1], strides = [1, 1]} : vector<8x8xf32> to vector<8x1xf32>
    %484 = vector.broadcast %483 : vector<8x1xf32> to vector<8x32xf32>
    %485 = vector.broadcast %32 : vector<1x32xf32> to vector<8x32xf32>
    %486 = arith.mulf %484, %485 : vector<8x32xf32>
    %487 = vector.extract_strided_slice %468 {offsets = [0, 4], sizes = [8, 1], strides = [1, 1]} : vector<8x8xf32> to vector<8x1xf32>
    %488 = vector.broadcast %487 : vector<8x1xf32> to vector<8x32xf32>
    %489 = vector.broadcast %33 : vector<1x32xf32> to vector<8x32xf32>
    %490 = arith.mulf %488, %489 : vector<8x32xf32>
    %491 = vector.extract_strided_slice %468 {offsets = [0, 5], sizes = [8, 1], strides = [1, 1]} : vector<8x8xf32> to vector<8x1xf32>
    %492 = vector.broadcast %491 : vector<8x1xf32> to vector<8x32xf32>
    %493 = vector.broadcast %34 : vector<1x32xf32> to vector<8x32xf32>
    %494 = arith.mulf %492, %493 : vector<8x32xf32>
    %495 = vector.extract_strided_slice %468 {offsets = [0, 6], sizes = [8, 1], strides = [1, 1]} : vector<8x8xf32> to vector<8x1xf32>
    %496 = vector.broadcast %495 : vector<8x1xf32> to vector<8x32xf32>
    %497 = vector.broadcast %35 : vector<1x32xf32> to vector<8x32xf32>
    %498 = arith.mulf %496, %497 : vector<8x32xf32>
    %499 = vector.extract_strided_slice %468 {offsets = [0, 7], sizes = [8, 1], strides = [1, 1]} : vector<8x8xf32> to vector<8x1xf32>
    %500 = vector.broadcast %499 : vector<8x1xf32> to vector<8x32xf32>
    %501 = vector.broadcast %36 : vector<1x32xf32> to vector<8x32xf32>
    %502 = arith.mulf %500, %501 : vector<8x32xf32>
    %503 = arith.addf %474, %478 : vector<8x32xf32>
    %504 = arith.addf %482, %486 : vector<8x32xf32>
    %505 = arith.addf %490, %494 : vector<8x32xf32>
    %506 = arith.addf %498, %502 : vector<8x32xf32>
    %507 = arith.addf %503, %504 : vector<8x32xf32>
    %508 = arith.addf %505, %506 : vector<8x32xf32>
    %509 = arith.addf %507, %508 : vector<8x32xf32>
    %510 = arith.addf %466, %509 : vector<8x32xf32>
    %511 = arith.negf %510 : vector<8x32xf32>
    %512 = math.exp %511 : vector<8x32xf32>
    %cst_40 = arith.constant 1.000000e+00 : f32
    %513 = vector.broadcast %cst_40 : f32 to vector<8x32xf32>
    %514 = arith.addf %513, %512 : vector<8x32xf32>
    %515 = arith.divf %513, %514 : vector<8x32xf32>
    %516 = vector.extract_strided_slice %515 {offsets = [0, 0], sizes = [8, 8], strides = [1, 1]} : vector<8x32xf32> to vector<8x8xf32>
    %517 = vector.extract_strided_slice %515 {offsets = [0, 8], sizes = [8, 8], strides = [1, 1]} : vector<8x32xf32> to vector<8x8xf32>
    %518 = vector.extract_strided_slice %515 {offsets = [0, 16], sizes = [8, 8], strides = [1, 1]} : vector<8x32xf32> to vector<8x8xf32>
    %cst_41 = arith.constant 2.000000e+00 : f32
    %519 = vector.broadcast %cst_41 : f32 to vector<8x8xf32>
    %520 = arith.mulf %519, %518 : vector<8x8xf32>
    %cst_42 = arith.constant 1.000000e+00 : f32
    %521 = vector.broadcast %cst_42 : f32 to vector<8x8xf32>
    %522 = arith.subf %520, %521 : vector<8x8xf32>
    %523 = vector.extract_strided_slice %515 {offsets = [0, 24], sizes = [8, 8], strides = [1, 1]} : vector<8x32xf32> to vector<8x8xf32>
    %524 = arith.mulf %517, %470 : vector<8x8xf32>
    %525 = arith.mulf %516, %522 : vector<8x8xf32>
    %526 = arith.addf %524, %525 : vector<8x8xf32>
    %527 = math.tanh %526 : vector<8x8xf32>
    %528 = arith.mulf %523, %527 : vector<8x8xf32>
    %529 = vector.extract_strided_slice %465 {offsets = [0, 0], sizes = [8, 1], strides = [1, 1]} : vector<8x8xf32> to vector<8x1xf32>
    %530 = vector.broadcast %529 : vector<8x1xf32> to vector<8x19xf32>
    %531 = vector.broadcast %37 : vector<1x19xf32> to vector<8x19xf32>
    %532 = arith.mulf %530, %531 : vector<8x19xf32>
    %533 = vector.extract_strided_slice %465 {offsets = [0, 1], sizes = [8, 1], strides = [1, 1]} : vector<8x8xf32> to vector<8x1xf32>
    %534 = vector.broadcast %533 : vector<8x1xf32> to vector<8x19xf32>
    %535 = vector.broadcast %38 : vector<1x19xf32> to vector<8x19xf32>
    %536 = arith.mulf %534, %535 : vector<8x19xf32>
    %537 = vector.extract_strided_slice %465 {offsets = [0, 2], sizes = [8, 1], strides = [1, 1]} : vector<8x8xf32> to vector<8x1xf32>
    %538 = vector.broadcast %537 : vector<8x1xf32> to vector<8x19xf32>
    %539 = vector.broadcast %39 : vector<1x19xf32> to vector<8x19xf32>
    %540 = arith.mulf %538, %539 : vector<8x19xf32>
    %541 = vector.extract_strided_slice %465 {offsets = [0, 3], sizes = [8, 1], strides = [1, 1]} : vector<8x8xf32> to vector<8x1xf32>
    %542 = vector.broadcast %541 : vector<8x1xf32> to vector<8x19xf32>
    %543 = vector.broadcast %40 : vector<1x19xf32> to vector<8x19xf32>
    %544 = arith.mulf %542, %543 : vector<8x19xf32>
    %545 = vector.extract_strided_slice %465 {offsets = [0, 4], sizes = [8, 1], strides = [1, 1]} : vector<8x8xf32> to vector<8x1xf32>
    %546 = vector.broadcast %545 : vector<8x1xf32> to vector<8x19xf32>
    %547 = vector.broadcast %41 : vector<1x19xf32> to vector<8x19xf32>
    %548 = arith.mulf %546, %547 : vector<8x19xf32>
    %549 = vector.extract_strided_slice %465 {offsets = [0, 5], sizes = [8, 1], strides = [1, 1]} : vector<8x8xf32> to vector<8x1xf32>
    %550 = vector.broadcast %549 : vector<8x1xf32> to vector<8x19xf32>
    %551 = vector.broadcast %42 : vector<1x19xf32> to vector<8x19xf32>
    %552 = arith.mulf %550, %551 : vector<8x19xf32>
    %553 = vector.extract_strided_slice %465 {offsets = [0, 6], sizes = [8, 1], strides = [1, 1]} : vector<8x8xf32> to vector<8x1xf32>
    %554 = vector.broadcast %553 : vector<8x1xf32> to vector<8x19xf32>
    %555 = vector.broadcast %43 : vector<1x19xf32> to vector<8x19xf32>
    %556 = arith.mulf %554, %555 : vector<8x19xf32>
    %557 = vector.extract_strided_slice %465 {offsets = [0, 7], sizes = [8, 1], strides = [1, 1]} : vector<8x8xf32> to vector<8x1xf32>
    %558 = vector.broadcast %557 : vector<8x1xf32> to vector<8x19xf32>
    %559 = vector.broadcast %44 : vector<1x19xf32> to vector<8x19xf32>
    %560 = arith.mulf %558, %559 : vector<8x19xf32>
    %561 = arith.addf %532, %536 : vector<8x19xf32>
    %562 = arith.addf %540, %544 : vector<8x19xf32>
    %563 = arith.addf %548, %552 : vector<8x19xf32>
    %564 = arith.addf %556, %560 : vector<8x19xf32>
    %565 = arith.addf %561, %562 : vector<8x19xf32>
    %566 = arith.addf %563, %564 : vector<8x19xf32>
    %567 = arith.addf %565, %566 : vector<8x19xf32>
    %568 = vector.broadcast %53 : vector<1x19xf32> to vector<8x19xf32>
    %569 = arith.addf %568, %567 : vector<8x19xf32>
    %570 = vector.extract_strided_slice %528 {offsets = [0, 0], sizes = [8, 1], strides = [1, 1]} : vector<8x8xf32> to vector<8x1xf32>
    %571 = vector.broadcast %570 : vector<8x1xf32> to vector<8x19xf32>
    %572 = vector.broadcast %45 : vector<1x19xf32> to vector<8x19xf32>
    %573 = arith.mulf %571, %572 : vector<8x19xf32>
    %574 = vector.extract_strided_slice %528 {offsets = [0, 1], sizes = [8, 1], strides = [1, 1]} : vector<8x8xf32> to vector<8x1xf32>
    %575 = vector.broadcast %574 : vector<8x1xf32> to vector<8x19xf32>
    %576 = vector.broadcast %46 : vector<1x19xf32> to vector<8x19xf32>
    %577 = arith.mulf %575, %576 : vector<8x19xf32>
    %578 = vector.extract_strided_slice %528 {offsets = [0, 2], sizes = [8, 1], strides = [1, 1]} : vector<8x8xf32> to vector<8x1xf32>
    %579 = vector.broadcast %578 : vector<8x1xf32> to vector<8x19xf32>
    %580 = vector.broadcast %47 : vector<1x19xf32> to vector<8x19xf32>
    %581 = arith.mulf %579, %580 : vector<8x19xf32>
    %582 = vector.extract_strided_slice %528 {offsets = [0, 3], sizes = [8, 1], strides = [1, 1]} : vector<8x8xf32> to vector<8x1xf32>
    %583 = vector.broadcast %582 : vector<8x1xf32> to vector<8x19xf32>
    %584 = vector.broadcast %48 : vector<1x19xf32> to vector<8x19xf32>
    %585 = arith.mulf %583, %584 : vector<8x19xf32>
    %586 = vector.extract_strided_slice %528 {offsets = [0, 4], sizes = [8, 1], strides = [1, 1]} : vector<8x8xf32> to vector<8x1xf32>
    %587 = vector.broadcast %586 : vector<8x1xf32> to vector<8x19xf32>
    %588 = vector.broadcast %49 : vector<1x19xf32> to vector<8x19xf32>
    %589 = arith.mulf %587, %588 : vector<8x19xf32>
    %590 = vector.extract_strided_slice %528 {offsets = [0, 5], sizes = [8, 1], strides = [1, 1]} : vector<8x8xf32> to vector<8x1xf32>
    %591 = vector.broadcast %590 : vector<8x1xf32> to vector<8x19xf32>
    %592 = vector.broadcast %50 : vector<1x19xf32> to vector<8x19xf32>
    %593 = arith.mulf %591, %592 : vector<8x19xf32>
    %594 = vector.extract_strided_slice %528 {offsets = [0, 6], sizes = [8, 1], strides = [1, 1]} : vector<8x8xf32> to vector<8x1xf32>
    %595 = vector.broadcast %594 : vector<8x1xf32> to vector<8x19xf32>
    %596 = vector.broadcast %51 : vector<1x19xf32> to vector<8x19xf32>
    %597 = arith.mulf %595, %596 : vector<8x19xf32>
    %598 = vector.extract_strided_slice %528 {offsets = [0, 7], sizes = [8, 1], strides = [1, 1]} : vector<8x8xf32> to vector<8x1xf32>
    %599 = vector.broadcast %598 : vector<8x1xf32> to vector<8x19xf32>
    %600 = vector.broadcast %52 : vector<1x19xf32> to vector<8x19xf32>
    %601 = arith.mulf %599, %600 : vector<8x19xf32>
    %602 = arith.addf %573, %577 : vector<8x19xf32>
    %603 = arith.addf %581, %585 : vector<8x19xf32>
    %604 = arith.addf %589, %593 : vector<8x19xf32>
    %605 = arith.addf %597, %601 : vector<8x19xf32>
    %606 = arith.addf %602, %603 : vector<8x19xf32>
    %607 = arith.addf %604, %605 : vector<8x19xf32>
    %608 = arith.addf %606, %607 : vector<8x19xf32>
    %609 = arith.addf %569, %608 : vector<8x19xf32>
    %610 = vector.extract_strided_slice %609 {offsets = [0, 0], sizes = [2, 19], strides = [1, 1]} : vector<8x19xf32> to vector<2x19xf32>
    %c0_43 = arith.constant 0 : index
    %c0_44 = arith.constant 0 : index
    %611 = vector.load %arg5[%c0_43, %c0_44] : memref<2x19xf32, #tpu.memory_space<vmem>>, vector<2x19xf32>
    tpu.vector_store %arg5[%c0_43, %c0_44], %610 {strides = array<i32>} : memref<2x19xf32, #tpu.memory_space<vmem>>, vector<2x19xf32>,
    return
  }
}

</mosaic_0001>

<bundles_post_ra>
// kernel: bilstm_forward.1
= control target key start
LH: loop header
LB: loop body
LE: loop exit
PB: predicated region body
PF: predicated region fallthrough
CT: control target
= control target key end

     0   :  { %v1282_v1 = vmov 2   ;;  %v1283_v2 = vmov 0   ;;  %vm57_vm0 = vcmask 1043456   ;;  %v1284_v5 = vmov 4   ;;  %s1637_s0 = inlined_call_operand.vmem [shape: f32[64,20], index: 0, kind: input, shape index: {}]   ;;  %s1638_s1 = inlined_call_operand.vmem [shape: f32[20,64], index: 1, kind: input, shape index: {}]   ;;  %s1639_s2 = inlined_call_operand.vmem [shape: f32[8,64], index: 2, kind: input, shape index: {}]   ;;  %s1640_s3 = inlined_call_operand.vmem [shape: f32[4,8,8], index: 3, kind: input, shape index: {}]   ;;  %s1641_s4 = inlined_call_operand.vmem [shape: f32[17,19], index: 4, kind: input, shape index: {}]   ;;  %s1642_s5 = inlined_call_operand.hbm [shape: f32[2,19], index: 5, kind: output, shape index: {}]  }
   0x1   :  { %v114_v0 = vld [vmem:[%s1640_s3] sm:$0xff]  ;;  %1115 = vset.pattern.permute.xlu1 %v1282_v1  ;;  %1113 = vset.pattern.permute.xlu0 %v1283_v2  ;;  %v31_v3 = vld [vmem:[%s1638_s1 + $0x10] sm:$0xf]  ;;  %v30_v4 = vld [vmem:[%s1638_s1 + $0x8] sm:$0xff] }
   0x2   :  { %129 = vperm.xlu1 %1115, %v114_v0   ;;  %119 = vperm.xlu0 %1113, %v114_v0  }
   0x3   :  { %1045 = vmatpush.msk.msra.mxu0 %vm57_vm0, %v31_v3  ;;  %1117 = vset.pattern.permute.xlu2 %v1284_v5 }
   0x4   :  { %10 = vsyncpa [#allocation3], 0  ;;  %v29_v6 = vld [vmem:[%s1638_s1] sm:$0xff]  ;;  %139 = vperm.xlu2 %1117, %v114_v0   ;;  %1075 = vmatpush.msk.msra.mxu1 %vm57_vm0, %v31_v3  ;;  %vm32_vm1 = vcmask 162816   ;;  %v1285_v8 = vmov 3   ;;  %v1286_v9 = vmov 1  }
   0x5   :  { %75 = vmatpush.msra.mxu0 %v30_v4  ;;  %v21_v7 = vld [vmem:[%s1637_s0] sm:$0xff]  ;;  %1076 = vmatpush.msk.msra.mxu2 %vm57_vm0, %v31_v3  ;;  %v1287_v10 = vmov 5   ;;  %v1288_v11 = vmov 6   ;;  %v1289_v12 = vmov 7   ;;  %v1054_v13 = vld [vmem:[%s1640_s3 + $0x10] sm:$0xff]  ;;  %s1290_s29 = smov 8  }
   0x6   :  { %1078 = vmatpush.msra.mxu1 %v30_v4  ;;  %1077 = vmatpush.msk.msra.mxu3 %vm57_vm0, %v31_v3  ;;  %v102_v19 = vld [vmem:[%s1639_s2] sm:$0xff]  ;;  %s1291_s2 = smov 112   ;;  %s1292_s7 = smov 16  }
   0x7   :  { %76 = vmatpush.msra.mxu0 %v29_v6  ;;  %1079 = vmatpush.msra.mxu2 %v30_v4  ;;  %v1376_v20 = vperm.slane %v102_v19, 0  ;;  %v1378_v21 = vperm.slane %v102_v19, 3  ;;  %v1380_v22 = vperm.slane %v102_v19, 1  ;;  %v1382_v24 = vperm.slane %v102_v19, 4  ;;  %s1301_s25 = smov 40   ;;  %s1310_s30 = smov [#allocation2]  }
   0x8   :  { %1046 = vmatmul.msk.f32.vlgmr.msra.gmra.mxu0 %vm32_vm1, %v21_v7  ;;  %1081 = vmatpush.msra.mxu1 %v29_v6  ;;  %v1384_v25 = vperm.slane %v102_v19, 5  ;;  %v1386_v26 = vperm.slane %v102_v19, 2  ;;  %v1388_v27 = vperm.slane %v102_v19, 7  ;;  %v1393_v32 = vperm.slane %v102_v19, 6  ;;  %s1034_s6 = sshll.u32 %s1310_s30, 4  ;;  %s1036_s8 = sshll.u32 %s1642_s5, 4  ;;  %s1035_s6 = int_to_ptr.vmem [resolvable:$true] %s1034_s6  ;;  %s1037_s8 = int_to_ptr.hbm [resolvable:$true] %s1036_s8 }
   0x9   :  { %1082 = vmatpush.msra.mxu2 %v29_v6  ;;  %1080 = vmatpush.msra.mxu3 %v30_v4 }
   0xa   :  { %1116 = vset.pattern.permute.xlu1 %v1285_v8  ;;  %1114 = vset.pattern.permute.xlu0 %v1286_v9 }
   0xb   :  { %134 = vperm.xlu1 %1116, %v114_v0   ;;  %124 = vperm.xlu0 %1114, %v114_v0  }
   0xc   :  { %1118 = vset.pattern.permute.xlu2 %v1287_v10  ;;  %1083 = vmatpush.msra.mxu3 %v29_v6 }
   0xd   :  { %144 = vperm.xlu2 %1118, %v114_v0  }
  0x13   :  { %1119 = vset.pattern.permute.xlu1 %v1288_v11 }
  0x14   :  { %149 = vperm.xlu1 %1119, %v114_v0  }
  0x15   :  { %1120 = vset.pattern.permute.xlu2 %v1289_v12 }
  0x16   :  { %154 = vperm.xlu2 %1120, %v114_v0  }
  0x1c   :  { %188 = vrot.lane.b32.xlu1 %v1054_v13, %s1290_s29 }
  0x5e   :  { %v140_v14 = vpop.permute.xlu2 %139 }
  0x5f   :  { %v142_v33 = vmul.f32 %v140_v14, %v1382_v24  ;;  %v1293_v14 = vmov 25  }
  0x60   :  { %1122 = vset.pattern.permute.xlu2 %v1293_v14 }
  0x67   :  { %v145_v17 = vpop.permute.xlu2 %144 }
  0x68   :  { %v147_v34 = vmul.f32 %v145_v17, %v1384_v25  ;;  %v22_v17 = vld [vmem:[%s1637_s0 + $0x8] sm:$0xff] }
  0x69   :  { %1047 = vmatmul.msk.f32.gmra.mxu0 %vm32_vm1, %v22_v17 }
  0x6a   :  { %v160_v41 = vadd.f32 %v147_v34, %v142_v33 }
  0x70   :  { %v155_v28 = vpop.permute.xlu2 %154 }
  0x71   :  { %v157_v36 = vmul.f32 %v155_v28, %v1388_v27  ;;  %v1297_v28 = vmov 28  }
  0x74   :  { %v130_v15 = vpop.permute.xlu1 %129  ;;  %v120_v16 = vpop.permute.xlu0 %119 }
  0x75   :  { %v122_v29 = vmul.f32 %v120_v16, %v1376_v20  ;;  %v132_v35 = vmul.f32 %v130_v15, %v1386_v26  ;;  %v1294_v15 = vmov 24   ;;  %v1295_v16 = vmov 26  }
  0x76   :  { %1121 = vset.pattern.permute.xlu1 %v1294_v15  ;;  %1123 = vset.pattern.permute.xlu0 %v1295_v16 }
  0x7d   :  { %v135_v18 = vpop.permute.xlu1 %134  ;;  %v125_v23 = vpop.permute.xlu0 %124 }
  0x7e   :  { %v137_v30 = vmul.f32 %v135_v18, %v1378_v21  ;;  %v127_v31 = vmul.f32 %v125_v23, %v1380_v22  ;;  %v1296_v23 = vmov 31  }
  0x80   :  { %v159_v38 = vadd.f32 %v137_v30, %v132_v35  ;;  %v158_v39 = vadd.f32 %v127_v31, %v122_v29  ;;  %v1298_v29 = vmov 27   ;;  %v1299_v30 = vmov 30  }
  0x81   :  { %v1300_v31 = vmov 29  }
  0x82   :  { %v162_v43 = vadd.f32 %v159_v38, %v158_v39 }
  0x85   :  { %v78_v45 = vpop.f32.mrf.mxu0 }
  0x86   :  { %v150_v37 = vpop.permute.xlu1 %149 }
  0x87   :  { %v152_v40 = vmul.f32 %v150_v37, %v1393_v32 }
  0x89   :  { %v161_v42 = vadd.f32 %v157_v36, %v152_v40 }
  0x8b   :  { %v163_v44 = vadd.f32 %v161_v42, %v160_v41 }
  0x8d   :  { %v164_v46 = vadd.f32 %v163_v44, %v162_v43 }
  0x8e   :  { %v189_v3 = vpop.permute.xlu1 %188 }
  0x8f   :  { %v165_v47 = vadd.f32 %v164_v46, %v78_v45 }
  0x91   :  { %v1055_v48 = vmul.f32 -1.442695, %v165_v47 }
  0x93   :  { %1202 = vpow2.f32 %v1055_v48 }
  0x99   :  { %v1203_v49 = vpop.eup %1202 }
  0x9a   :  { %v169_v50 = vadd.f32 1.0, %v1203_v49 }
  0x9c   :  { %1204 = vrcp.f32 %v169_v50  ;;  %v181_v54 = vand.u32 2147483648, %v169_v50  ;;  %v179_v56 = vand.u32 2147483647, %v169_v50  ;;  %vm175_vm3 = vweird.f32 %v169_v50 }
  0x9e   :  { %v182_v58 = vor.u32 1.1754944e-38, %v181_v54  ;;  %vm180_vm5 = vcmp.eq.f32.partialorder %v179_v56, 8.507059e+37 }
  0xa2   :  { %v1205_v51 = vpop.eup %1204 }
  0xa3   :  { %v171_v52 = vmul.f32 %v1205_v51, %v169_v50  ;;  %vm176_vm2 = vweird.f32 %v1205_v51 }
  0xa4   :  { %vm177_vm4 = vmor %vm175_vm3, %vm176_vm2 }
  0xa5   :  { %v172_v53 = vsub.f32 1.0, %v171_v52 }
  0xa7   :  { %v173_v55 = vmul.f32 %v1205_v51, %v172_v53 }
  0xa9   :  { %v174_v57 = vadd.f32 %v1205_v51, %v173_v55 }
  0xab   :  { %v178_v59 = vsel %vm177_vm4, %v1205_v51, %v174_v57 }
  0xac   :  { %v183_v60 = vsel %vm180_vm5, %v182_v58, %v178_v59 }
  0xad   :  { %v185_v61 = vmul.f32 2.0, %v183_v60  ;;  %v191_v4 = vmul.f32 %v189_v3, %v183_v60 }
  0xaf   :  { %v1056_v62 = vadd.f32 -1.0, %v185_v61 }
  0xb1   :  { %193 = vrot.lane.b32.xlu0 %v1056_v62, %s1291_s2 }
  0xe6   :  { %v81_v55 = vpop.f32.mrf.mxu0 }
 0x123   :  { %v194_v63 = vpop.permute.xlu0 %193 }
 0x124   :  { %v196_v0 = vmul.f32 %v194_v63, %v183_v60 }
 0x126   :  { %198 = vrot.lane.b32.xlu2 %v196_v0, %s1290_s29 }
 0x180   :  { %v199_v6 = vpop.permute.xlu2 %198 }
 0x181   :  { %v1402_v7 = vadd.f32 %v199_v6, %v191_v4 }
 0x183   :  { %1206 = vtanh.f32 %v1402_v7 }
 0x189   :  { %v1207_v13 = vpop.eup %1206 }
 0x18a   :  { %204 = vrot.lane.b32.xlu0 %v1207_v13, %s1292_s7 }
 0x1fc   :  { %v205_v18 = vpop.permute.xlu0 %204 }
 0x1fd   :  { %v207_v19 = vmul.f32 %v205_v18, %v183_v60 }
 0x1ff   :  { %220 = vperm.xlu0 %1123, %v207_v19   ;;  %215 = vperm.xlu2 %1122, %v207_v19  }
 0x200   :  { %210 = vperm.xlu1 %1121, %v207_v19  }
 0x207   :  { %1128 = vset.pattern.permute.xlu0 %v1296_v23  ;;  %1125 = vset.pattern.permute.xlu2 %v1297_v28 }
 0x208   :  { %1124 = vset.pattern.permute.xlu1 %v1298_v29  ;;  %245 = vperm.xlu0 %1128, %v207_v19  }
 0x209   :  { %230 = vperm.xlu2 %1125, %v207_v19   ;;  %225 = vperm.xlu1 %1124, %v207_v19  }
 0x210   :  { %1130 = vset.pattern.permute.xlu0 %v1293_v14 }
 0x211   :  { %1127 = vset.pattern.permute.xlu2 %v1299_v30  ;;  %1126 = vset.pattern.permute.xlu1 %v1300_v31 }
 0x212   :  { %240 = vperm.xlu2 %1127, %v207_v19   ;;  %235 = vperm.xlu1 %1126, %v207_v19  }
 0x21a   :  { %1129 = vset.pattern.permute.xlu2 %v1294_v15  ;;  %1131 = vset.pattern.permute.xlu1 %v1295_v16 }
 0x259   :  { %v216_v33 = vpop.permute.xlu2 %215 }
 0x25a   :  { %v218_v44 = vmul.f32 %v216_v33, %v1380_v22 }
 0x263   :  { %v231_v36 = vpop.permute.xlu2 %230 }
 0x264   :  { %v233_v46 = vmul.f32 %v231_v36, %v1382_v24 }
 0x26c   :  { %v241_v40 = vpop.permute.xlu2 %240 }
 0x26d   :  { %v243_v47 = vmul.f32 %v241_v40, %v1393_v32  ;;  %v23_v40 = vld [vmem:[%s1637_s0 + $0x10] sm:$0xff] }
 0x26e   :  { %1048 = vmatmul.msk.f32.vlgmr.msra.gmra.mxu1 %vm32_vm1, %v23_v40 }
 0x271   :  { %v221_v35 = vpop.permute.xlu0 %220 }
 0x272   :  { %v211_v34 = vpop.permute.xlu1 %210  ;;  %v223_v41 = vmul.f32 %v221_v35, %v1386_v26 }
 0x273   :  { %v213_v42 = vmul.f32 %v211_v34, %v1376_v20 }
 0x275   :  { %v249_v50 = vadd.f32 %v218_v44, %v213_v42 }
 0x27a   :  { %v246_v38 = vpop.permute.xlu0 %245 }
 0x27b   :  { %v226_v37 = vpop.permute.xlu1 %225  ;;  %v248_v43 = vmul.f32 %v246_v38, %v1388_v27 }
 0x27c   :  { %v228_v39 = vmul.f32 %v226_v37, %v1378_v21 }
 0x27d   :  { %v252_v51 = vadd.f32 %v248_v43, %v243_v47 }
 0x27e   :  { %v250_v48 = vadd.f32 %v228_v39, %v223_v41 }
 0x280   :  { %v253_v53 = vadd.f32 %v250_v48, %v249_v50 }
 0x284   :  { %v236_v45 = vpop.permute.xlu1 %235 }
 0x285   :  { %v238_v49 = vmul.f32 %v236_v45, %v1384_v25 }
 0x287   :  { %v251_v52 = vadd.f32 %v238_v49, %v233_v46 }
 0x289   :  { %v254_v54 = vadd.f32 %v252_v51, %v251_v52 }
 0x28b   :  { %v255_v56 = vadd.f32 %v254_v54, %v253_v53 }
 0x28d   :  { %v256_v57 = vadd.f32 %v255_v56, %v81_v55 }
 0x28f   :  { %v1057_v58 = vmul.f32 -1.442695, %v256_v57 }
 0x291   :  { %1208 = vpow2.f32 %v1057_v58 }
 0x297   :  { %v1209_v59 = vpop.eup %1208 }
 0x298   :  { %v260_v60 = vadd.f32 1.0, %v1209_v59 }
 0x29a   :  { %1210 = vrcp.f32 %v260_v60  ;;  %v272_v0 = vand.u32 2147483648, %v260_v60  ;;  %v270_v4 = vand.u32 2147483647, %v260_v60  ;;  %vm266_vm7 = vweird.f32 %v260_v60 }
 0x29c   :  { %v273_v13 = vor.u32 1.1754944e-38, %v272_v0  ;;  %vm271_vm9 = vcmp.eq.f32.partialorder %v270_v4, 8.507059e+37 }
 0x2a0   :  { %v1211_v61 = vpop.eup %1210 }
 0x2a1   :  { %v262_v62 = vmul.f32 %v1211_v61, %v260_v60  ;;  %vm267_vm6 = vweird.f32 %v1211_v61 }
 0x2a2   :  { %vm268_vm8 = vmor %vm266_vm7, %vm267_vm6 }
 0x2a3   :  { %v263_v63 = vsub.f32 1.0, %v262_v62 }
 0x2a5   :  { %v264_v3 = vmul.f32 %v1211_v61, %v263_v63 }
 0x2a7   :  { %v265_v6 = vadd.f32 %v1211_v61, %v264_v3 }
 0x2a9   :  { %v269_v17 = vsel %vm268_vm8, %v1211_v61, %v265_v6 }
 0x2aa   :  { %v274_v18 = vsel %vm271_vm9, %v273_v13, %v269_v17 }
 0x2ab   :  { %v276_v19 = vmul.f32 2.0, %v274_v18  ;;  %v278_v36 = vmul.f32 %v274_v18, %v1402_v7 }
 0x2ad   :  { %v1058_v33 = vadd.f32 -1.0, %v276_v19 }
 0x2af   :  { %280 = vrot.lane.b32.xlu1 %v1058_v33, %s1291_s2 }
 0x2eb   :  { %v84_v0 = vpop.f32.mrf.mxu1 }
 0x321   :  { %v281_v34 = vpop.permute.xlu1 %280 }
 0x322   :  { %v283_v35 = vmul.f32 %v281_v34, %v274_v18 }
 0x324   :  { %285 = vrot.lane.b32.xlu2 %v283_v35, %s1290_s29 }
 0x37e   :  { %v286_v37 = vpop.permute.xlu2 %285 }
 0x37f   :  { %v1432_v38 = vadd.f32 %v286_v37, %v278_v36 }
 0x381   :  { %1212 = vtanh.f32 %v1432_v38 }
 0x387   :  { %v1213_v39 = vpop.eup %1212 }
 0x388   :  { %291 = vrot.lane.b32.xlu1 %v1213_v39, %s1292_s7 }
 0x3fa   :  { %v292_v41 = vpop.permute.xlu1 %291 }
 0x3fb   :  { %v294_v42 = vmul.f32 %v292_v41, %v274_v18 }
 0x3fd   :  { %307 = vperm.xlu1 %1131, %v294_v42   ;;  %302 = vperm.xlu0 %1130, %v294_v42  }
 0x3fe   :  { %297 = vperm.xlu2 %1129, %v294_v42  }
 0x405   :  { %1133 = vset.pattern.permute.xlu1 %v1297_v28  ;;  %1135 = vset.pattern.permute.xlu0 %v1299_v30 }
 0x406   :  { %1132 = vset.pattern.permute.xlu2 %v1298_v29  ;;  %317 = vperm.xlu1 %1133, %v294_v42  }
 0x407   :  { %327 = vperm.xlu0 %1135, %v294_v42   ;;  %312 = vperm.xlu2 %1132, %v294_v42  }
 0x40e   :  { %1136 = vset.pattern.permute.xlu1 %v1296_v23 }
 0x40f   :  { %1134 = vset.pattern.permute.xlu2 %v1300_v31  ;;  %332 = vperm.xlu1 %1136, %v294_v42  }
 0x410   :  { %322 = vperm.xlu2 %1134, %v294_v42   ;;  %1137 = vset.pattern.permute.xlu0 %v1294_v15 }
 0x417   :  { %1138 = vset.pattern.permute.xlu1 %v1293_v14 }
 0x418   :  { %1139 = vset.pattern.permute.xlu2 %v1295_v16 }
 0x458   :  { %v298_v7 = vpop.permute.xlu2 %297 }
 0x459   :  { %v300_v51 = vmul.f32 %v298_v7, %v1376_v20 }
 0x461   :  { %v313_v44 = vpop.permute.xlu2 %312 }
 0x462   :  { %v315_v52 = vmul.f32 %v313_v44, %v1378_v21 }
 0x46a   :  { %v323_v47 = vpop.permute.xlu2 %322 }
 0x46b   :  { %v325_v54 = vmul.f32 %v323_v47, %v1384_v25 }
 0x46f   :  { %v308_v43 = vpop.permute.xlu1 %307  ;;  %v303_v45 = vpop.permute.xlu0 %302 }
 0x470   :  { %v310_v48 = vmul.f32 %v308_v43, %v1386_v26  ;;  %v305_v49 = vmul.f32 %v303_v45, %v1380_v22 }
 0x472   :  { %v337_v56 = vadd.f32 %v315_v52, %v310_v48  ;;  %v336_v57 = vadd.f32 %v305_v49, %v300_v51  ;;  %v24_v49 = vld [vmem:[%s1637_s0 + $0x18] sm:$0xff] }
 0x473   :  { %1049 = vmatmul.msk.f32.gmra.mxu1 %vm32_vm1, %v24_v49 }
 0x474   :  { %v340_v62 = vadd.f32 %v337_v56, %v336_v57 }
 0x478   :  { %v318_v46 = vpop.permute.xlu1 %317 }
 0x479   :  { %v328_v50 = vpop.permute.xlu0 %327  ;;  %v320_v53 = vmul.f32 %v318_v46, %v1382_v24 }
 0x47a   :  { %v330_v58 = vmul.f32 %v328_v50, %v1393_v32 }
 0x47b   :  { %v338_v60 = vadd.f32 %v325_v54, %v320_v53 }
 0x481   :  { %v333_v55 = vpop.permute.xlu1 %332 }
 0x482   :  { %v335_v59 = vmul.f32 %v333_v55, %v1388_v27 }
 0x484   :  { %v339_v61 = vadd.f32 %v335_v59, %v330_v58 }
 0x486   :  { %v341_v63 = vadd.f32 %v339_v61, %v338_v60 }
 0x488   :  { %v342_v3 = vadd.f32 %v341_v63, %v340_v62 }
 0x48a   :  { %v343_v4 = vadd.f32 %v342_v3, %v84_v0 }
 0x48c   :  { %v1059_v6 = vmul.f32 -1.442695, %v343_v4 }
 0x48e   :  { %1214 = vpow2.f32 %v1059_v6 }
 0x494   :  { %v1215_v13 = vpop.eup %1214 }
 0x495   :  { %v347_v17 = vadd.f32 1.0, %v1215_v13 }
 0x497   :  { %1216 = vrcp.f32 %v347_v17  ;;  %v359_v34 = vand.u32 2147483648, %v347_v17  ;;  %v357_v36 = vand.u32 2147483647, %v347_v17  ;;  %vm353_vm11 = vweird.f32 %v347_v17 }
 0x499   :  { %v360_v39 = vor.u32 1.1754944e-38, %v359_v34  ;;  %vm358_vm13 = vcmp.eq.f32.partialorder %v357_v36, 8.507059e+37 }
 0x49d   :  { %v1217_v18 = vpop.eup %1216 }
 0x49e   :  { %v349_v19 = vmul.f32 %v1217_v18, %v347_v17  ;;  %vm354_vm10 = vweird.f32 %v1217_v18 }
 0x49f   :  { %vm355_vm12 = vmor %vm353_vm11, %vm354_vm10 }
 0x4a0   :  { %v350_v33 = vsub.f32 1.0, %v349_v19 }
 0x4a2   :  { %v351_v35 = vmul.f32 %v1217_v18, %v350_v33 }
 0x4a4   :  { %v352_v37 = vadd.f32 %v1217_v18, %v351_v35 }
 0x4a6   :  { %v356_v40 = vsel %vm355_vm12, %v1217_v18, %v352_v37 }
 0x4a7   :  { %v361_v41 = vsel %vm358_vm13, %v360_v39, %v356_v40 }
 0x4a8   :  { %v363_v42 = vmul.f32 2.0, %v361_v41  ;;  %v365_v45 = vmul.f32 %v361_v41, %v1432_v38 }
 0x4aa   :  { %v1060_v7 = vadd.f32 -1.0, %v363_v42 }
 0x4ac   :  { %367 = vrot.lane.b32.xlu2 %v1060_v7, %s1291_s2 }
 0x4f0   :  { %v87_v34 = vpop.f32.mrf.mxu1 }
 0x506   :  { %v368_v43 = vpop.permute.xlu2 %367 }
 0x507   :  { %v370_v44 = vmul.f32 %v368_v43, %v361_v41 }
 0x509   :  { %372 = vrot.lane.b32.xlu1 %v370_v44, %s1290_s29 }
 0x57b   :  { %v373_v46 = vpop.permute.xlu1 %372 }
 0x57c   :  { %v1459_v47 = vadd.f32 %v373_v46, %v365_v45 }
 0x57e   :  { %1218 = vtanh.f32 %v1459_v47 }
 0x584   :  { %v1219_v48 = vpop.eup %1218 }
 0x585   :  { %378 = vrot.lane.b32.xlu2 %v1219_v48, %s1292_s7 }
 0x5df   :  { %v379_v50 = vpop.permute.xlu2 %378 }
 0x5e0   :  { %v381_v51 = vmul.f32 %v379_v50, %v361_v41 }
 0x5e2   :  { %394 = vperm.xlu2 %1139, %v381_v51   ;;  %389 = vperm.xlu1 %1138, %v381_v51  }
 0x5e3   :  { %384 = vperm.xlu0 %1137, %v381_v51  }
 0x5ea   :  { %1141 = vset.pattern.permute.xlu2 %v1297_v28  ;;  %1140 = vset.pattern.permute.xlu1 %v1298_v29 }
 0x5eb   :  { %1142 = vset.pattern.permute.xlu0 %v1300_v31  ;;  %404 = vperm.xlu2 %1141, %v381_v51  }
 0x5ec   :  { %399 = vperm.xlu1 %1140, %v381_v51   ;;  %409 = vperm.xlu0 %1142, %v381_v51  }
 0x5f3   :  { %1144 = vset.pattern.permute.xlu2 %v1296_v23 }
 0x5f4   :  { %1143 = vset.pattern.permute.xlu1 %v1299_v30  ;;  %419 = vperm.xlu2 %1144, %v381_v51  }
 0x5f5   :  { %414 = vperm.xlu1 %1143, %v381_v51   ;;  %1147 = vset.pattern.permute.xlu0 %v1295_v16 }
 0x5fc   :  { %1146 = vset.pattern.permute.xlu2 %v1293_v14 }
 0x5fd   :  { %1145 = vset.pattern.permute.xlu1 %v1294_v15 }
 0x63c   :  { %v395_v38 = vpop.permute.xlu2 %394 }
 0x63d   :  { %v397_v59 = vmul.f32 %v395_v38, %v1386_v26 }
 0x645   :  { %v405_v54 = vpop.permute.xlu2 %404 }
 0x646   :  { %v407_v0 = vmul.f32 %v405_v54, %v1382_v24 }
 0x64e   :  { %v420_v58 = vpop.permute.xlu2 %419 }
 0x64f   :  { %v422_v3 = vmul.f32 %v420_v58, %v1388_v27  ;;  %v25_v58 = vld [vmem:[%s1637_s0 + $0x20] sm:$0xff] }
 0x650   :  { %1050 = vmatmul.msk.f32.vlgmr.msra.gmra.mxu2 %vm32_vm1, %v25_v58 }
 0x654   :  { %v390_v52 = vpop.permute.xlu1 %389 }
 0x655   :  { %v385_v53 = vpop.permute.xlu0 %384  ;;  %v392_v60 = vmul.f32 %v390_v52, %v1380_v22 }
 0x656   :  { %v387_v61 = vmul.f32 %v385_v53, %v1376_v20 }
 0x658   :  { %v423_v13 = vadd.f32 %v392_v60, %v387_v61 }
 0x65e   :  { %v400_v55 = vpop.permute.xlu1 %399  ;;  %v410_v56 = vpop.permute.xlu0 %409 }
 0x65f   :  { %v402_v57 = vmul.f32 %v400_v55, %v1378_v21  ;;  %v412_v62 = vmul.f32 %v410_v56, %v1384_v25 }
 0x661   :  { %v424_v4 = vadd.f32 %v402_v57, %v397_v59  ;;  %v425_v17 = vadd.f32 %v412_v62, %v407_v0 }
 0x663   :  { %v427_v19 = vadd.f32 %v424_v4, %v423_v13 }
 0x667   :  { %v415_v63 = vpop.permute.xlu1 %414 }
 0x668   :  { %v417_v6 = vmul.f32 %v415_v63, %v1393_v32 }
 0x66a   :  { %v426_v18 = vadd.f32 %v422_v3, %v417_v6 }
 0x66c   :  { %v428_v33 = vadd.f32 %v426_v18, %v425_v17 }
 0x66e   :  { %v429_v35 = vadd.f32 %v428_v33, %v427_v19 }
 0x670   :  { %v430_v36 = vadd.f32 %v429_v35, %v87_v34 }
 0x672   :  { %v1061_v37 = vmul.f32 -1.442695, %v430_v36 }
 0x674   :  { %1220 = vpow2.f32 %v1061_v37 }
 0x67a   :  { %v1221_v39 = vpop.eup %1220 }
 0x67b   :  { %v434_v40 = vadd.f32 1.0, %v1221_v39 }
 0x67d   :  { %1222 = vrcp.f32 %v434_v40  ;;  %v446_v43 = vand.u32 2147483648, %v434_v40  ;;  %v444_v45 = vand.u32 2147483647, %v434_v40  ;;  %vm440_vm15 = vweird.f32 %v434_v40 }
 0x67f   :  { %v447_v48 = vor.u32 1.1754944e-38, %v446_v43  ;;  %vm445_vm2 = vcmp.eq.f32.partialorder %v444_v45, 8.507059e+37 }
 0x683   :  { %v1223_v41 = vpop.eup %1222 }
 0x684   :  { %v436_v42 = vmul.f32 %v1223_v41, %v434_v40  ;;  %vm441_vm14 = vweird.f32 %v1223_v41 }
 0x685   :  { %vm442_vm0 = vmor %vm440_vm15, %vm441_vm14 }
 0x686   :  { %v437_v7 = vsub.f32 1.0, %v436_v42 }
 0x688   :  { %v438_v44 = vmul.f32 %v1223_v41, %v437_v7 }
 0x68a   :  { %v439_v46 = vadd.f32 %v1223_v41, %v438_v44 }
 0x68c   :  { %v443_v49 = vsel %vm442_vm0, %v1223_v41, %v439_v46 }
 0x68d   :  { %v448_v50 = vsel %vm445_vm2, %v447_v48, %v443_v49 }
 0x68e   :  { %v450_v51 = vmul.f32 2.0, %v448_v50  ;;  %v452_v54 = vmul.f32 %v448_v50, %v1459_v47 }
 0x690   :  { %v1062_v38 = vadd.f32 -1.0, %v450_v51 }
 0x692   :  { %454 = vrot.lane.b32.xlu1 %v1062_v38, %s1291_s2 }
 0x6d3   :  { %v90_v43 = vpop.f32.mrf.mxu2 }
 0x704   :  { %v455_v52 = vpop.permute.xlu1 %454 }
 0x705   :  { %v457_v53 = vmul.f32 %v455_v52, %v448_v50 }
 0x707   :  { %459 = vrot.lane.b32.xlu2 %v457_v53, %s1290_s29 }
 0x761   :  { %v460_v55 = vpop.permute.xlu2 %459 }
 0x762   :  { %v1486_v56 = vadd.f32 %v460_v55, %v452_v54 }
 0x764   :  { %1224 = vtanh.f32 %v1486_v56 }
 0x76a   :  { %v1225_v57 = vpop.eup %1224 }
 0x76b   :  { %465 = vrot.lane.b32.xlu0 %v1225_v57, %s1292_s7 }
 0x7dd   :  { %v466_v59 = vpop.permute.xlu0 %465 }
 0x7de   :  { %v468_v60 = vmul.f32 %v466_v59, %v448_v50 }
 0x7e0   :  { %481 = vperm.xlu0 %1147, %v468_v60   ;;  %476 = vperm.xlu2 %1146, %v468_v60  }
 0x7e1   :  { %471 = vperm.xlu1 %1145, %v468_v60  }
 0x7e8   :  { %1152 = vset.pattern.permute.xlu0 %v1296_v23  ;;  %1149 = vset.pattern.permute.xlu2 %v1297_v28 }
 0x7e9   :  { %1148 = vset.pattern.permute.xlu1 %v1298_v29  ;;  %506 = vperm.xlu0 %1152, %v468_v60  }
 0x7ea   :  { %491 = vperm.xlu2 %1149, %v468_v60   ;;  %486 = vperm.xlu1 %1148, %v468_v60  }
 0x7f1   :  { %1154 = vset.pattern.permute.xlu0 %v1293_v14 }
 0x7f2   :  { %1151 = vset.pattern.permute.xlu2 %v1299_v30  ;;  %1150 = vset.pattern.permute.xlu1 %v1300_v31 }
 0x7f3   :  { %501 = vperm.xlu2 %1151, %v468_v60   ;;  %496 = vperm.xlu1 %1150, %v468_v60  }
 0x7fb   :  { %1153 = vset.pattern.permute.xlu2 %v1294_v15  ;;  %1155 = vset.pattern.permute.xlu1 %v1295_v16 }
 0x83a   :  { %v477_v47 = vpop.permute.xlu2 %476 }
 0x83b   :  { %v479_v19 = vmul.f32 %v477_v47, %v1380_v22 }
 0x844   :  { %v492_v63 = vpop.permute.xlu2 %491 }
 0x845   :  { %v494_v34 = vmul.f32 %v492_v63, %v1382_v24 }
 0x84d   :  { %v502_v6 = vpop.permute.xlu2 %501 }
 0x84e   :  { %v504_v35 = vmul.f32 %v502_v6, %v1393_v32  ;;  %v26_v6 = vld [vmem:[%s1637_s0 + $0x28] sm:$0xff] }
 0x84f   :  { %1051 = vmatmul.msk.f32.gmra.mxu2 %vm32_vm1, %v26_v6 }
 0x852   :  { %v482_v62 = vpop.permute.xlu0 %481 }
 0x853   :  { %v472_v61 = vpop.permute.xlu1 %471  ;;  %v484_v13 = vmul.f32 %v482_v62, %v1386_v26 }
 0x854   :  { %v474_v17 = vmul.f32 %v472_v61, %v1376_v20 }
 0x856   :  { %v510_v39 = vadd.f32 %v479_v19, %v474_v17 }
 0x85b   :  { %v507_v3 = vpop.permute.xlu0 %506 }
 0x85c   :  { %v487_v0 = vpop.permute.xlu1 %486  ;;  %v509_v18 = vmul.f32 %v507_v3, %v1388_v27 }
 0x85d   :  { %v489_v4 = vmul.f32 %v487_v0, %v1378_v21 }
 0x85e   :  { %v513_v40 = vadd.f32 %v509_v18, %v504_v35 }
 0x85f   :  { %v511_v36 = vadd.f32 %v489_v4, %v484_v13 }
 0x861   :  { %v514_v42 = vadd.f32 %v511_v36, %v510_v39 }
 0x865   :  { %v497_v33 = vpop.permute.xlu1 %496 }
 0x866   :  { %v499_v37 = vmul.f32 %v497_v33, %v1384_v25 }
 0x868   :  { %v512_v41 = vadd.f32 %v499_v37, %v494_v34 }
 0x86a   :  { %v515_v7 = vadd.f32 %v513_v40, %v512_v41 }
 0x86c   :  { %v516_v44 = vadd.f32 %v515_v7, %v514_v42 }
 0x86e   :  { %v517_v45 = vadd.f32 %v516_v44, %v90_v43 }
 0x870   :  { %v1063_v46 = vmul.f32 -1.442695, %v517_v45 }
 0x872   :  { %1226 = vpow2.f32 %v1063_v46 }
 0x878   :  { %v1227_v48 = vpop.eup %1226 }
 0x879   :  { %v521_v49 = vadd.f32 1.0, %v1227_v48 }
 0x87b   :  { %1228 = vrcp.f32 %v521_v49  ;;  %v533_v52 = vand.u32 2147483648, %v521_v49  ;;  %v531_v54 = vand.u32 2147483647, %v521_v49  ;;  %vm527_vm4 = vweird.f32 %v521_v49 }
 0x87d   :  { %v534_v57 = vor.u32 1.1754944e-38, %v533_v52  ;;  %vm532_vm6 = vcmp.eq.f32.partialorder %v531_v54, 8.507059e+37 }
 0x881   :  { %v1229_v50 = vpop.eup %1228 }
 0x882   :  { %v523_v51 = vmul.f32 %v1229_v50, %v521_v49  ;;  %vm528_vm3 = vweird.f32 %v1229_v50 }
 0x883   :  { %vm529_vm5 = vmor %vm527_vm4, %vm528_vm3 }
 0x884   :  { %v524_v38 = vsub.f32 1.0, %v523_v51 }
 0x886   :  { %v525_v53 = vmul.f32 %v1229_v50, %v524_v38 }
 0x888   :  { %v526_v55 = vadd.f32 %v1229_v50, %v525_v53 }
 0x88a   :  { %v530_v58 = vsel %vm529_vm5, %v1229_v50, %v526_v55 }
 0x88b   :  { %v535_v59 = vsel %vm532_vm6, %v534_v57, %v530_v58 }
 0x88c   :  { %v537_v60 = vmul.f32 2.0, %v535_v59  ;;  %v539_v63 = vmul.f32 %v535_v59, %v1486_v56 }
 0x88e   :  { %v1064_v47 = vadd.f32 -1.0, %v537_v60 }
 0x890   :  { %541 = vrot.lane.b32.xlu1 %v1064_v47, %s1291_s2 }
 0x8d2   :  { %v93_v52 = vpop.f32.mrf.mxu2 }
 0x902   :  { %v542_v61 = vpop.permute.xlu1 %541 }
 0x903   :  { %v544_v62 = vmul.f32 %v542_v61, %v535_v59 }
 0x905   :  { %546 = vrot.lane.b32.xlu2 %v544_v62, %s1290_s29 }
 0x95f   :  { %v547_v0 = vpop.permute.xlu2 %546 }
 0x960   :  { %v1513_v3 = vadd.f32 %v547_v0, %v539_v63 }
 0x962   :  { %1230 = vtanh.f32 %v1513_v3 }
 0x968   :  { %v1231_v4 = vpop.eup %1230 }
 0x969   :  { %552 = vrot.lane.b32.xlu1 %v1231_v4, %s1292_s7 }
 0x9db   :  { %v553_v13 = vpop.permute.xlu1 %552 }
 0x9dc   :  { %v555_v17 = vmul.f32 %v553_v13, %v535_v59 }
 0x9de   :  { %568 = vperm.xlu1 %1155, %v555_v17   ;;  %563 = vperm.xlu0 %1154, %v555_v17  }
 0x9df   :  { %558 = vperm.xlu2 %1153, %v555_v17  }
 0x9e6   :  { %1157 = vset.pattern.permute.xlu1 %v1297_v28  ;;  %1159 = vset.pattern.permute.xlu0 %v1299_v30 }
 0x9e7   :  { %1156 = vset.pattern.permute.xlu2 %v1298_v29  ;;  %578 = vperm.xlu1 %1157, %v555_v17  }
 0x9e8   :  { %588 = vperm.xlu0 %1159, %v555_v17   ;;  %573 = vperm.xlu2 %1156, %v555_v17  }
 0x9ef   :  { %1160 = vset.pattern.permute.xlu1 %v1296_v23 }
 0x9f0   :  { %1158 = vset.pattern.permute.xlu2 %v1300_v31  ;;  %593 = vperm.xlu1 %1160, %v555_v17  }
 0x9f1   :  { %583 = vperm.xlu2 %1158, %v555_v17   ;;  %1161 = vset.pattern.permute.xlu0 %v1294_v15 }
 0x9f8   :  { %1162 = vset.pattern.permute.xlu1 %v1293_v14 }
 0x9f9   :  { %1163 = vset.pattern.permute.xlu2 %v1295_v16 }
 0xa39   :  { %v559_v56 = vpop.permute.xlu2 %558 }
 0xa3a   :  { %v561_v40 = vmul.f32 %v559_v56, %v1376_v20 }
 0xa42   :  { %v574_v19 = vpop.permute.xlu2 %573 }
 0xa43   :  { %v576_v41 = vmul.f32 %v574_v19, %v1378_v21 }
 0xa4b   :  { %v584_v35 = vpop.permute.xlu2 %583 }
 0xa4c   :  { %v586_v7 = vmul.f32 %v584_v35, %v1384_v25 }
 0xa50   :  { %v569_v18 = vpop.permute.xlu1 %568  ;;  %v564_v33 = vpop.permute.xlu0 %563 }
 0xa51   :  { %v571_v36 = vmul.f32 %v569_v18, %v1386_v26  ;;  %v566_v37 = vmul.f32 %v564_v33, %v1380_v22 }
 0xa53   :  { %v598_v44 = vadd.f32 %v576_v41, %v571_v36  ;;  %v597_v45 = vadd.f32 %v566_v37, %v561_v40  ;;  %v27_v37 = vld [vmem:[%s1637_s0 + $0x30] sm:$0xff] }
 0xa54   :  { %1052 = vmatmul.msk.f32.vlgmr.msra.gmra.mxu3 %vm32_vm1, %v27_v37 }
 0xa55   :  { %v601_v51 = vadd.f32 %v598_v44, %v597_v45 }
 0xa59   :  { %v579_v34 = vpop.permute.xlu1 %578 }
 0xa5a   :  { %v589_v39 = vpop.permute.xlu0 %588  ;;  %v581_v42 = vmul.f32 %v579_v34, %v1382_v24 }
 0xa5b   :  { %v591_v46 = vmul.f32 %v589_v39, %v1393_v32 }
 0xa5c   :  { %v599_v49 = vadd.f32 %v586_v7, %v581_v42 }
 0xa62   :  { %v594_v43 = vpop.permute.xlu1 %593 }
 0xa63   :  { %v596_v48 = vmul.f32 %v594_v43, %v1388_v27 }
 0xa65   :  { %v600_v50 = vadd.f32 %v596_v48, %v591_v46 }
 0xa67   :  { %v602_v38 = vadd.f32 %v600_v50, %v599_v49 }
 0xa69   :  { %v603_v53 = vadd.f32 %v602_v38, %v601_v51 }
 0xa6b   :  { %v604_v54 = vadd.f32 %v603_v53, %v93_v52 }
 0xa6d   :  { %v1065_v55 = vmul.f32 -1.442695, %v604_v54 }
 0xa6f   :  { %1232 = vpow2.f32 %v1065_v55 }
 0xa75   :  { %v1233_v57 = vpop.eup %1232 }
 0xa76   :  { %v608_v58 = vadd.f32 1.0, %v1233_v57 }
 0xa78   :  { %1234 = vrcp.f32 %v608_v58  ;;  %v620_v61 = vand.u32 2147483648, %v608_v58  ;;  %v618_v63 = vand.u32 2147483647, %v608_v58  ;;  %vm614_vm8 = vweird.f32 %v608_v58 }
 0xa7a   :  { %v621_v4 = vor.u32 1.1754944e-38, %v620_v61  ;;  %vm619_vm10 = vcmp.eq.f32.partialorder %v618_v63, 8.507059e+37 }
 0xa7e   :  { %v1235_v59 = vpop.eup %1234 }
 0xa7f   :  { %v610_v60 = vmul.f32 %v1235_v59, %v608_v58  ;;  %vm615_vm7 = vweird.f32 %v1235_v59 }
 0xa80   :  { %vm616_vm9 = vmor %vm614_vm8, %vm615_vm7  ;;  %vm1027_vm7 = vcmask 148480  }
 0xa81   :  { %v611_v47 = vsub.f32 1.0, %v610_v60 }
 0xa83   :  { %v612_v62 = vmul.f32 %v1235_v59, %v611_v47 }
 0xa85   :  { %v613_v0 = vadd.f32 %v1235_v59, %v612_v62 }
 0xa87   :  { %v617_v6 = vsel %vm616_vm9, %v1235_v59, %v613_v0 }
 0xa88   :  { %v622_v13 = vsel %vm619_vm10, %v621_v4, %v617_v6 }
 0xa89   :  { %v624_v17 = vmul.f32 2.0, %v622_v13  ;;  %v626_v33 = vmul.f32 %v622_v13, %v1513_v3 }
 0xa8b   :  { %v1066_v56 = vadd.f32 -1.0, %v624_v17 }
 0xa8d   :  { %628 = vrot.lane.b32.xlu2 %v1066_v56, %s1291_s2 }
 0xad7   :  { %v96_v60 = vpop.f32.mrf.mxu3 }
 0xae7   :  { %v629_v18 = vpop.permute.xlu2 %628 }
 0xae8   :  { %v631_v19 = vmul.f32 %v629_v18, %v622_v13 }
 0xaea   :  { %633 = vrot.lane.b32.xlu1 %v631_v19, %s1290_s29 }
 0xb5c   :  { %v634_v34 = vpop.permute.xlu1 %633 }
 0xb5d   :  { %v1540_v35 = vadd.f32 %v634_v34, %v626_v33 }
 0xb5f   :  { %1236 = vtanh.f32 %v1540_v35 }
 0xb65   :  { %v1237_v36 = vpop.eup %1236 }
 0xb66   :  { %639 = vrot.lane.b32.xlu2 %v1237_v36, %s1292_s7 }
 0xbc0   :  { %v640_v39 = vpop.permute.xlu2 %639 }
 0xbc1   :  { %v642_v40 = vmul.f32 %v640_v39, %v622_v13 }
 0xbc3   :  { %655 = vperm.xlu2 %1163, %v642_v40   ;;  %650 = vperm.xlu1 %1162, %v642_v40  }
 0xbc4   :  { %645 = vperm.xlu0 %1161, %v642_v40  }
 0xbcb   :  { %1165 = vset.pattern.permute.xlu2 %v1297_v28  ;;  %1164 = vset.pattern.permute.xlu1 %v1298_v29 }
 0xbcc   :  { %1166 = vset.pattern.permute.xlu0 %v1300_v31  ;;  %665 = vperm.xlu2 %1165, %v642_v40  }
 0xbcd   :  { %660 = vperm.xlu1 %1164, %v642_v40   ;;  %670 = vperm.xlu0 %1166, %v642_v40  }
 0xbd4   :  { %1168 = vset.pattern.permute.xlu2 %v1296_v23 }
 0xbd5   :  { %1167 = vset.pattern.permute.xlu1 %v1299_v30  ;;  %680 = vperm.xlu2 %1168, %v642_v40  }
 0xbd6   :  { %675 = vperm.xlu1 %1167, %v642_v40   ;;  %1175 = vset.pattern.permute.xlu0 %v1295_v16 }
 0xbdd   :  { %1170 = vset.pattern.permute.xlu2 %v1286_v9 }
 0xbde   :  { %1169 = vset.pattern.permute.xlu1 %v1283_v2 }
 0xc1d   :  { %v656_v3 = vpop.permute.xlu2 %655 }
 0xc1e   :  { %v658_v48 = vmul.f32 %v656_v3, %v1386_v26 }
 0xc26   :  { %v666_v7 = vpop.permute.xlu2 %665 }
 0xc27   :  { %v668_v2 = vmul.f32 %v666_v7, %v1382_v24 }
 0xc2f   :  { %v681_v46 = vpop.permute.xlu2 %680 }
 0xc30   :  { %v683_v38 = vmul.f32 %v681_v46, %v1388_v27 }
 0xc35   :  { %v651_v41 = vpop.permute.xlu1 %650 }
 0xc36   :  { %v646_v42 = vpop.permute.xlu0 %645  ;;  %v653_v49 = vmul.f32 %v651_v41, %v1380_v22  ;;  %v1071_v41 = vld [vmem:[%s1640_s3 + $0x8] sm:$0xff] }
 0xc37   :  { %v648_v50 = vmul.f32 %v646_v42, %v1376_v20 }
 0xc39   :  { %v684_v54 = vadd.f32 %v653_v49, %v648_v50 }
 0xc3f   :  { %v661_v43 = vpop.permute.xlu1 %660  ;;  %v671_v44 = vpop.permute.xlu0 %670 }
 0xc40   :  { %v663_v45 = vmul.f32 %v661_v43, %v1378_v21  ;;  %v673_v51 = vmul.f32 %v671_v44, %v1384_v25 }
 0xc42   :  { %v685_v52 = vadd.f32 %v663_v45, %v658_v48  ;;  %v686_v55 = vadd.f32 %v673_v51, %v668_v2 }
 0xc44   :  { %v688_v58 = vadd.f32 %v685_v52, %v684_v54 }
 0xc48   :  { %v676_v9 = vpop.permute.xlu1 %675 }
 0xc49   :  { %v678_v53 = vmul.f32 %v676_v9, %v1393_v32 }
 0xc4b   :  { %v687_v57 = vadd.f32 %v683_v38, %v678_v53 }
 0xc4d   :  { %v689_v59 = vadd.f32 %v687_v57, %v686_v55 }
 0xc4f   :  { %v690_v47 = vadd.f32 %v689_v59, %v688_v58 }
 0xc51   :  { %v691_v61 = vadd.f32 %v690_v47, %v96_v60 }
 0xc53   :  { %v1067_v62 = vmul.f32 -1.442695, %v691_v61 }
 0xc55   :  { %1238 = vpow2.f32 %v1067_v62 }
 0xc5b   :  { %v1239_v63 = vpop.eup %1238 }
 0xc5c   :  { %v695_v0 = vadd.f32 1.0, %v1239_v63 }
 0xc5e   :  { %1240 = vrcp.f32 %v695_v0  ;;  %v707_v17 = vand.u32 2147483648, %v695_v0  ;;  %v705_v18 = vand.u32 2147483647, %v695_v0  ;;  %vm701_vm12 = vweird.f32 %v695_v0 }
 0xc60   :  { %v708_v33 = vor.u32 1.1754944e-38, %v707_v17  ;;  %vm706_vm14 = vcmp.eq.f32.partialorder %v705_v18, 8.507059e+37 }
 0xc64   :  { %v1241_v4 = vpop.eup %1240 }
 0xc65   :  { %v697_v6 = vmul.f32 %v1241_v4, %v695_v0  ;;  %vm702_vm11 = vweird.f32 %v1241_v4 }
 0xc66   :  { %vm703_vm13 = vmor %vm701_vm12, %vm702_vm11 }
 0xc67   :  { %v698_v13 = vsub.f32 1.0, %v697_v6 }
 0xc69   :  { %v699_v56 = vmul.f32 %v1241_v4, %v698_v13 }
 0xc6b   :  { %v700_v19 = vadd.f32 %v1241_v4, %v699_v56 }
 0xc6d   :  { %v704_v34 = vsel %vm703_vm13, %v1241_v4, %v700_v19 }
 0xc6e   :  { %v709_v36 = vsel %vm706_vm14, %v708_v33, %v704_v34 }
 0xc6f   :  { %v711_v37 = vmul.f32 2.0, %v709_v36  ;;  %v713_v42 = vmul.f32 %v709_v36, %v1540_v35 }
 0xc71   :  { %v1068_v39 = vadd.f32 -1.0, %v711_v37 }
 0xc73   :  { %715 = vrot.lane.b32.xlu1 %v1068_v39, %s1291_s2 }
 0xc7b   :  { %823 = vperm.xlu1 %1169, %v1071_v41  }
 0xc83   :  { %1171 = vset.pattern.permute.xlu1 %v1282_v1  ;;  %v28_v1 = vld [vmem:[%s1637_s0 + $0x38] sm:$0xff] }
 0xc84   :  { %833 = vperm.xlu1 %1171, %v1071_v41   ;;  %1053 = vmatmul.msk.f32.gmra.mxu3 %vm32_vm1, %v28_v1 }
 0xc8c   :  { %1173 = vset.pattern.permute.xlu1 %v1294_v15 }
 0xce5   :  { %v716_v40 = vpop.permute.xlu1 %715 }
 0xce6   :  { %v718_v3 = vmul.f32 %v716_v40, %v709_v36 }
 0xce8   :  { %720 = vrot.lane.b32.xlu2 %v718_v3, %s1290_s29 }
 0xced   :  { %v824_v46 = vpop.permute.xlu1 %823 }
 0xcf0   :  { %828 = vperm.xlu2 %1170, %v1071_v41  }
 0xcf8   :  { %1172 = vset.pattern.permute.xlu2 %v1285_v8 }
 0xcf9   :  { %838 = vperm.xlu2 %1172, %v1071_v41  }
 0xd01   :  { %1174 = vset.pattern.permute.xlu2 %v1293_v14 }
 0xd07   :  { %v99_v4 = vpop.f32.mrf.mxu3 }
 0xd42   :  { %v721_v7 = vpop.permute.xlu2 %720 }
 0xd43   :  { %v1574_v43 = vadd.f32 %v721_v7, %v713_v42 }
 0xd45   :  { %1242 = vtanh.f32 %v1574_v43 }
 0xd4a   :  { %v829_v35 = vpop.permute.xlu2 %828 }
 0xd4b   :  { %v1243_v44 = vpop.eup %1242  ;;  %v831_v33 = vmul.f32 %v829_v35, %v1380_v22 }
 0xd4c   :  { %726 = vrot.lane.b32.xlu0 %v1243_v44, %s1292_s7 }
 0xd53   :  { %v839_v48 = vpop.permute.xlu2 %838 }
 0xd54   :  { %v841_v34 = vmul.f32 %v839_v48, %v1378_v21 }
 0xdbe   :  { %v727_v8 = vpop.permute.xlu0 %726 }
 0xdbf   :  { %v729_v45 = vmul.f32 %v727_v8, %v709_v36  ;;  %v826_v36 = vmul.f32 %v824_v46, %v1376_v20 }
 0xdc1   :  { %742 = vperm.xlu0 %1175, %v729_v45   ;;  %737 = vperm.xlu2 %1174, %v729_v45   ;;  %v862_v7 = vadd.f32 %v831_v33, %v826_v36 }
 0xdc2   :  { %732 = vperm.xlu1 %1173, %v729_v45  }
 0xdc9   :  { %1180 = vset.pattern.permute.xlu0 %v1296_v23  ;;  %1177 = vset.pattern.permute.xlu2 %v1297_v28 }
 0xdca   :  { %1176 = vset.pattern.permute.xlu1 %v1298_v29  ;;  %767 = vperm.xlu0 %1180, %v729_v45  }
 0xdcb   :  { %752 = vperm.xlu2 %1177, %v729_v45   ;;  %747 = vperm.xlu1 %1176, %v729_v45  }
 0xdd2   :  { %1181 = vset.pattern.permute.xlu0 %v1284_v5  ;;  %v834_v5 = vpop.permute.xlu1 %833 }
 0xdd3   :  { %1179 = vset.pattern.permute.xlu2 %v1299_v30  ;;  %1178 = vset.pattern.permute.xlu1 %v1300_v31  ;;  %v836_v37 = vmul.f32 %v834_v5, %v1386_v26 }
 0xdd4   :  { %762 = vperm.xlu2 %1179, %v729_v45   ;;  %757 = vperm.xlu1 %1178, %v729_v45  }
 0xdd5   :  { %843 = vperm.xlu0 %1181, %v1071_v41   ;;  %v863_v44 = vadd.f32 %v841_v34, %v836_v37 }
 0xddc   :  { %1182 = vset.pattern.permute.xlu1 %v1287_v10  ;;  %1183 = vset.pattern.permute.xlu2 %v1288_v11 }
 0xddd   :  { %848 = vperm.xlu1 %1182, %v1071_v41   ;;  %853 = vperm.xlu2 %1183, %v1071_v41  }
 0xde5   :  { %1184 = vset.pattern.permute.xlu1 %v1289_v12 }
 0xde6   :  { %858 = vperm.xlu1 %1184, %v1071_v41  }
 0xe1b   :  { %v738_v49 = vpop.permute.xlu2 %737 }
 0xe1c   :  { %v740_v54 = vmul.f32 %v738_v49, %v1380_v22 }
 0xe25   :  { %v753_v9 = vpop.permute.xlu2 %752 }
 0xe26   :  { %v755_v57 = vmul.f32 %v753_v9, %v1382_v24 }
 0xe2e   :  { %v763_v10 = vpop.permute.xlu2 %762 }
 0xe2f   :  { %v765_v58 = vmul.f32 %v763_v10, %v1393_v32 }
 0xe33   :  { %v743_v51 = vpop.permute.xlu0 %742 }
 0xe34   :  { %v733_v50 = vpop.permute.xlu1 %732  ;;  %v745_v11 = vmul.f32 %v743_v51, %v1386_v26 }
 0xe35   :  { %v735_v53 = vmul.f32 %v733_v50, %v1376_v20 }
 0xe37   :  { %v771_v47 = vadd.f32 %v740_v54, %v735_v53  ;;  %v854_v19 = vpop.permute.xlu2 %853 }
 0xe38   :  { %v856_v3 = vmul.f32 %v854_v19, %v1393_v32 }
 0xe3c   :  { %v768_v38 = vpop.permute.xlu0 %767 }
 0xe3d   :  { %v748_v2 = vpop.permute.xlu1 %747  ;;  %v770_v12 = vmul.f32 %v768_v38, %v1388_v27 }
 0xe3e   :  { %v750_v52 = vmul.f32 %v748_v2, %v1378_v21  ;;  %v866_v21 = vadd.f32 %v863_v44, %v862_v7 }
 0xe3f   :  { %v774_v61 = vadd.f32 %v770_v12, %v765_v58  ;;  %v1072_v12 = vld [vmem:[%s1640_s3 + $0x18] sm:$0xff] }
 0xe40   :  { %v772_v59 = vadd.f32 %v750_v52, %v745_v11 }
 0xe42   :  { %v775_v63 = vadd.f32 %v772_v59, %v771_v47 }
 0xe46   :  { %v758_v55 = vpop.permute.xlu1 %757 }
 0xe47   :  { %v760_v60 = vmul.f32 %v758_v55, %v1384_v25  ;;  %v844_v18 = vpop.permute.xlu0 %843 }
 0xe48   :  { %v846_v39 = vmul.f32 %v844_v18, %v1382_v24 }
 0xe49   :  { %v773_v62 = vadd.f32 %v760_v60, %v755_v57 }
 0xe4b   :  { %v776_v0 = vadd.f32 %v774_v61, %v773_v62 }
 0xe4d   :  { %v777_v6 = vadd.f32 %v776_v0, %v775_v63 }
 0xe4f   :  { %v778_v13 = vadd.f32 %v777_v6, %v99_v4  ;;  %v849_v17 = vpop.permute.xlu1 %848 }
 0xe50   :  { %v851_v40 = vmul.f32 %v849_v17, %v1384_v25 }
 0xe51   :  { %v1069_v56 = vmul.f32 -1.442695, %v778_v13 }
 0xe52   :  { %v864_v22 = vadd.f32 %v851_v40, %v846_v39  ;;  %v1302_v40 = vmov 58  }
 0xe53   :  { %1244 = vpow2.f32 %v1069_v56  ;;  %1187 = vset.pattern.permute.xlu0 %v1302_v40 }
 0xe58   :  { %v859_v41 = vpop.permute.xlu1 %858 }
 0xe59   :  { %v1245_v42 = vpop.eup %1244  ;;  %v861_v1 = vmul.f32 %v859_v41, %v1388_v27  ;;  %v1304_v41 = vmov 56  }
 0xe5a   :  { %v782_v8 = vadd.f32 1.0, %v1245_v42  ;;  %1185 = vset.pattern.permute.xlu1 %v1304_v41 }
 0xe5b   :  { %v865_v45 = vadd.f32 %v861_v1, %v856_v3  ;;  %v1303_v3 = vmov 57   ;;  %v1305_v1 = vmov 60  }
 0xe5c   :  { %1246 = vrcp.f32 %v782_v8  ;;  %v794_v32 = vand.u32 2147483648, %v782_v8  ;;  %v792_v49 = vand.u32 2147483647, %v782_v8  ;;  %vm788_vm15 = vweird.f32 %v782_v8  ;;  %1186 = vset.pattern.permute.xlu2 %v1303_v3 }
 0xe5d   :  { %v867_v20 = vadd.f32 %v865_v45, %v864_v22 }
 0xe5e   :  { %v795_v27 = vor.u32 1.1754944e-38, %v794_v32  ;;  %vm793_vm2 = vcmp.eq.f32.partialorder %v792_v49, 8.507059e+37 }
 0xe5f   :  { %v868_v35 = vadd.f32 %v867_v20, %v866_v21 }
 0xe61   :  { %v869_v26 = vadd.f32 %v868_v35, %v99_v4 }
 0xe62   :  { %v1247_v46 = vpop.eup %1246 }
 0xe63   :  { %v784_v24 = vmul.f32 %v1247_v46, %v782_v8  ;;  %v1073_v48 = vmul.f32 -1.442695, %v869_v26  ;;  %vm789_vm1 = vweird.f32 %v1247_v46  ;;  %v1306_v8 = vmov 59  }
 0xe64   :  { %vm790_vm0 = vmor %vm788_vm15, %vm789_vm1 }
 0xe65   :  { %v785_v25 = vsub.f32 1.0, %v784_v24  ;;  %1248 = vpow2.f32 %v1073_v48 }
 0xe67   :  { %v786_v5 = vmul.f32 %v1247_v46, %v785_v25 }
 0xe69   :  { %v787_v50 = vadd.f32 %v1247_v46, %v786_v5 }
 0xe6b   :  { %v1249_v51 = vpop.eup %1248  ;;  %v791_v9 = vsel %vm790_vm0, %v1247_v46, %v787_v50 }
 0xe6c   :  { %v873_v2 = vadd.f32 1.0, %v1249_v51  ;;  %v796_v38 = vsel %vm793_vm2, %v795_v27, %v791_v9  ;;  %v104_v9 = vld [vmem:[%s1641_s4 + $0x8] sm:$0xff] }
 0xe6d   :  { %v798_v52 = vmul.f32 2.0, %v796_v38  ;;  %v800_v17 = vmul.f32 %v796_v38, %v1574_v43 }
 0xe6e   :  { %1250 = vrcp.f32 %v873_v2  ;;  %v885_v55 = vand.u32 2147483648, %v873_v2  ;;  %v883_v58 = vand.u32 2147483647, %v873_v2  ;;  %vm879_vm4 = vweird.f32 %v873_v2 }
 0xe6f   :  { %v1070_v10 = vadd.f32 -1.0, %v798_v52  ;;  %v993_v52 = vperm.slane %v104_v9, 3 }
 0xe70   :  { %v886_v60 = vor.u32 1.1754944e-38, %v885_v55  ;;  %vm884_vm6 = vcmp.eq.f32.partialorder %v883_v58, 8.507059e+37  ;;  %v1017_v55 = vperm.slane %v104_v9, 7 }
 0xe71   :  { %802 = vrot.lane.b32.xlu2 %v1070_v10, %s1291_s2 }
 0xe74   :  { %v1251_v11 = vpop.eup %1250 }
 0xe75   :  { %v875_v53 = vmul.f32 %v1251_v11, %v873_v2  ;;  %vm880_vm3 = vweird.f32 %v1251_v11 }
 0xe76   :  { %vm881_vm5 = vmor %vm879_vm4, %vm880_vm3 }
 0xe77   :  { %v876_v54 = vsub.f32 1.0, %v875_v53 }
 0xe79   :  { %892 = vrot.lane.b32.xlu2 %v1072_v12, %s1301_s25  ;;  %v877_v57 = vmul.f32 %v1251_v11, %v876_v54  ;;  %v987_v12 = vperm.slane %v104_v9, 2  ;;  %v975_v54 = vperm.slane %v104_v9, 0 }
 0xe7b   :  { %v878_v59 = vadd.f32 %v1251_v11, %v877_v57 }
 0xe7d   :  { %v882_v47 = vsel %vm881_vm5, %v1251_v11, %v878_v59 }
 0xe7e   :  { %v887_v61 = vsel %vm884_vm6, %v886_v60, %v882_v47  ;;  %v981_v47 = vperm.slane %v104_v9, 1 }
 0xe7f   :  { %v889_v62 = vmul.f32 2.0, %v887_v61 }
 0xe81   :  { %v1074_v63 = vadd.f32 -1.0, %v889_v62 }
 0xe83   :  { %897 = vrot.lane.b32.xlu0 %v1074_v63, %s1291_s2  ;;  %v1011_v63 = vperm.slane %v104_v9, 6 }
 0xecb   :  { %v803_v0 = vpop.permute.xlu2 %802 }
 0xecc   :  { %v805_v4 = vmul.f32 %v803_v0, %v796_v38 }
 0xece   :  { %807 = vrot.lane.b32.xlu1 %v805_v4, %s1290_s29 }
 0xed3   :  { %v893_v33 = vpop.permute.xlu2 %892 }
 0xed4   :  { %v895_v34 = vmul.f32 %v893_v33, %v887_v61 }
 0xef5   :  { %v898_v6 = vpop.permute.xlu0 %897 }
 0xef6   :  { %v900_v13 = vmul.f32 %v898_v6, %v887_v61 }
 0xef8   :  { %902 = vrot.lane.b32.xlu0 %v900_v13, %s1290_s29 }
 0xf40   :  { %v808_v56 = vpop.permute.xlu1 %807 }
 0xf41   :  { %v810_v18 = vadd.f32 %v808_v56, %v800_v17  ;;  %v1005_v17 = vperm.slane %v104_v9, 5 }
 0xf43   :  { %1252 = vtanh.f32 %v810_v18 }
 0xf49   :  { %v1253_v19 = vpop.eup %1252 }
 0xf4a   :  { %813 = vrot.lane.b32.xlu1 %v1253_v19, %s1292_s7 }
 0xf6a   :  { %v903_v36 = vpop.permute.xlu0 %902 }
 0xf6b   :  { %v905_v37 = vadd.f32 %v903_v36, %v895_v34 }
 0xf6d   :  { %1254 = vtanh.f32 %v905_v37 }
 0xf73   :  { %v1255_v39 = vpop.eup %1254 }
 0xf74   :  { %908 = vrot.lane.b32.xlu2 %v1255_v39, %s1292_s7 }
 0xfbc   :  { %v814_v7 = vpop.permute.xlu1 %813 }
 0xfbd   :  { %v816_v44 = vmul.f32 %v814_v7, %v796_v38 }
 0xfce   :  { %v909_v43 = vpop.permute.xlu2 %908 }
 0xfcf   :  { %v911_v42 = vmul.f32 %v909_v43, %v887_v61  ;;  %v999_v61 = vperm.slane %v104_v9, 4 }
 0xfd1   :  { %984 = vperm.xlu0 %1187, %v911_v42   ;;  %978 = vperm.xlu2 %1186, %v911_v42  }
 0xfd2   :  { %972 = vperm.xlu1 %1185, %v911_v42  }
 0xfd9   :  { %1190 = vset.pattern.permute.xlu0 %v1294_v15  ;;  %1189 = vset.pattern.permute.xlu2 %v1305_v1  ;;  %v1307_v15 = vmov 63  }
 0xfda   :  { %1188 = vset.pattern.permute.xlu1 %v1306_v8  ;;  %996 = vperm.xlu2 %1189, %v911_v42  }
 0xfdb   :  { %990 = vperm.xlu1 %1188, %v911_v42   ;;  %914 = vperm.xlu0 %1190, %v816_v44  }
 0xfe2   :  { %1192 = vset.pattern.permute.xlu2 %v1295_v16  ;;  %v1309_v16 = vmov 61  }
 0xfe3   :  { %1191 = vset.pattern.permute.xlu1 %v1293_v14  ;;  %1195 = vset.pattern.permute.xlu0 %v1300_v31  ;;  %v1308_v14 = vmov 62  }
 0xfe4   :  { %926 = vperm.xlu2 %1192, %v816_v44   ;;  %920 = vperm.xlu1 %1191, %v816_v44  }
 0xfe5   :  { %944 = vperm.xlu0 %1195, %v816_v44  }
 0xfec   :  { %1194 = vset.pattern.permute.xlu2 %v1297_v28  ;;  %1193 = vset.pattern.permute.xlu1 %v1298_v29 }
 0xfed   :  { %1200 = vset.pattern.permute.xlu0 %v1307_v15  ;;  %938 = vperm.xlu2 %1194, %v816_v44   ;;  %v1201_v15 = vld [vmem:[%s1641_s4 + $0x10] ss:$0 sm:$0xff] }
 0xfee   :  { %932 = vperm.xlu1 %1193, %v816_v44   ;;  %1014 = vperm.xlu0 %1200, %v911_v42  }
 0xff5   :  { %1197 = vset.pattern.permute.xlu2 %v1296_v23 }
 0xff6   :  { %1196 = vset.pattern.permute.xlu1 %v1299_v30  ;;  %956 = vperm.xlu2 %1197, %v816_v44   ;;  %v103_v30 = vld [vmem:[%s1641_s4] sm:$0xff] }
 0xff7   :  { %950 = vperm.xlu1 %1196, %v816_v44   ;;  %v953_v48 = vperm.slane %v103_v30, 6  ;;  %v959_v25 = vperm.slane %v103_v30, 7  ;;  %v947_v32 = vperm.slane %v103_v30, 5  ;;  %v935_v5 = vperm.slane %v103_v30, 3 }
 0xff8   :  { %v929_v49 = vperm.slane %v103_v30, 2  ;;  %v941_v50 = vperm.slane %v103_v30, 4  ;;  %v923_v27 = vperm.slane %v103_v30, 1  ;;  %v917_v2 = vperm.slane %v103_v30, 0 }
 0xffe   :  { %1199 = vset.pattern.permute.xlu2 %v1308_v14 }
 0xfff   :  { %1198 = vset.pattern.permute.xlu1 %v1309_v16  ;;  %1008 = vperm.xlu2 %1199, %v911_v42  }
0x1000   :  { %1002 = vperm.xlu1 %1198, %v911_v42  }
0x102b   :  { %v979_v28 = vpop.permute.xlu2 %978 }
0x102c   :  { %v982_v37 = vmul.f32 %v981_v47, %v979_v28 }
0x1034   :  { %v997_v29 = vpop.permute.xlu2 %996 }
0x1035   :  { %v1000_v39 = vmul.f32 %v999_v61, %v997_v29 }
0x103e   :  { %v927_v21 = vpop.permute.xlu2 %926 }
0x103f   :  { %v930_v57 = vmul.f32 %v929_v49, %v927_v21 }
0x1043   :  { %v985_v45 = vpop.permute.xlu0 %984 }
0x1044   :  { %v973_v31 = vpop.permute.xlu1 %972  ;;  %v988_v56 = vmul.f32 %v987_v12, %v985_v45 }
0x1045   :  { %v976_v19 = vmul.f32 %v975_v54, %v973_v31 }
0x1047   :  { %v939_v26 = vpop.permute.xlu2 %938  ;;  %v1019_v7 = vadd.f32 %v982_v37, %v976_v19 }
0x1048   :  { %v942_v58 = vmul.f32 %v941_v50, %v939_v26 }
0x104d   :  { %v991_v22 = vpop.permute.xlu1 %990  ;;  %v915_v35 = vpop.permute.xlu0 %914 }
0x104e   :  { %v918_v62 = vmul.f32 %v917_v2, %v915_v35  ;;  %v994_v4 = vmul.f32 %v993_v52, %v991_v22 }
0x1050   :  { %v957_v24 = vpop.permute.xlu2 %956  ;;  %v1020_v3 = vadd.f32 %v994_v4, %v988_v56 }
0x1051   :  { %v960_v10 = vmul.f32 %v959_v25, %v957_v24 }
0x1052   :  { %v1023_v14 = vadd.f32 %v1020_v3, %v1019_v7 }
0x1056   :  { %v921_v20 = vpop.permute.xlu1 %920 }
0x1057   :  { %v945_v46 = vpop.permute.xlu0 %944  ;;  %v924_v59 = vmul.f32 %v923_v27, %v921_v20 }
0x1058   :  { %v948_v11 = vmul.f32 %v947_v32, %v945_v46 }
0x1059   :  { %v1009_v18 = vpop.permute.xlu2 %1008  ;;  %v961_v33 = vadd.f32 %v924_v59, %v918_v62 }
0x105a   :  { %v963_v6 = vadd.f32 %v948_v11, %v942_v58  ;;  %v1012_v41 = vmul.f32 %v1011_v63, %v1009_v18 }
0x1060   :  { %v933_v23 = vpop.permute.xlu1 %932  ;;  %v1015_v0 = vpop.permute.xlu0 %1014 }
0x1061   :  { %v936_v53 = vmul.f32 %v935_v5, %v933_v23  ;;  %v1018_v34 = vmul.f32 %v1017_v55, %v1015_v0 }
0x1063   :  { %v962_v13 = vadd.f32 %v936_v53, %v930_v57  ;;  %v1022_v44 = vadd.f32 %v1018_v34, %v1012_v41 }
0x1065   :  { %v965_v43 = vadd.f32 %v962_v13, %v961_v33 }
0x1069   :  { %v951_v51 = vpop.permute.xlu1 %950 }
0x106a   :  { %v954_v38 = vmul.f32 %v953_v48, %v951_v51 }
0x106c   :  { %v964_v60 = vadd.f32 %v960_v10, %v954_v38 }
0x106e   :  { %v966_v36 = vadd.f32 %v964_v60, %v963_v6 }
0x1070   :  { %v967_v1 = vadd.f32 %v966_v36, %v965_v43 }
0x1072   :  { %v1003_v40 = vpop.permute.xlu1 %1002  ;;  %v969_v31 = vadd.f32 %v1201_v15, %v967_v1 }
0x1073   :  { %v1006_v42 = vmul.f32 %v1005_v17, %v1003_v40 }
0x1075   :  { %v1021_v8 = vadd.f32 %v1006_v42, %v1000_v39 }
0x1077   :  { %v1024_v16 = vadd.f32 %v1022_v44, %v1021_v8 }
0x1079   :  { %v1025_v28 = vadd.f32 %v1024_v16, %v1023_v14 }
0x107b   :  { %v1026_v29 = vadd.f32 %v1025_v28, %v969_v31 }
0x107d   :  { %1028 = vst.msk [vmem:[#allocation2] sm:$0x3] %vm1027_vm7, %v1026_v29 }
0x107e   :  { %1039 = dma.vmem_to_hbm [thread:$0]  %s1035_s6, 32, %s1037_s8, [#allocation3]  }
0x107f   :  { %1280 = dma.done.wait [#allocation3], 32  }
0x1080   :  { %1281 = vsyncadd [#allocation3], 4294967264 }
0x1081   :  { %1044 = vsyncpa [#allocation3], 1 }

</bundles_post_ra>
